<compile_context>
chip_gen: v6e
topology: v6e:2x2x1
jax: 0.10.0
libtpu: 0.0.40
codegen_flags: <defaults>
</compile_context>

<pallas_src>
import jax
import jax.numpy as jnp
from jax.experimental import pallas as pl
from jax.experimental.pallas import tpu as pltpu

ED = 8  # time-embedding dim (module default)


def _samples_per_step(n):
    """Batch folding policy.

    v5e/v6e have a single TensorCore: fold the whole batch into one grid step
    (no per-step grid / DMA-bookkeeping overhead).  v7x has two TensorCores per
    chip: keep a 2-way sample split so both cores get work.
    """
    kind = ""
    try:
        kind = jax.devices()[0].device_kind.lower()
    except Exception:
        pass
    if n >= 2 and n % 2 == 0 and ("v7" in kind or "7x" in kind or "tpu7" in kind):
        return n // 2
    return n


def prepare_down_params(p, hw):
    """One-time parameter prep (hoisted out of the per-call wrapper).

    Builds the block-banded conv matrices, pre-tiles all per-channel vectors to
    the lane-folded (x*C + c) layout, and packs them into two arrays.
    """
    H, W = hw
    W2 = W // 2
    C_in = p["w1"].shape[2]
    C_out = p["w4"].shape[3]
    emb_dim = p["lw"].shape[0]
    VW = W2 * max(C_in, C_out)

    def band(w):
        # w: (3, 3, cin, cout) HWIO ->  (3, W2*cin, W2*cout) block-banded:
        # band[dy][xin*cin+ci, x*cout+co] = w[dy, dx, ci, co], dx = xin - x + 1,
        # out-of-image taps simply dropped (no horizontal padding needed).
        cin, cout = w.shape[2], w.shape[3]
        mats = []
        for dy in range(3):
            acc = jnp.zeros((W2 * cin, W2 * cout), jnp.float32)
            for dx in range(3):
                acc = acc + jnp.kron(
                    jnp.eye(W2, k=1 - dx, dtype=jnp.float32),
                    w[dy, dx].astype(jnp.float32))
            mats.append(acc)
        b = jnp.stack(mats)
        return jnp.pad(b, ((0, 0), (0, VW - W2 * cin), (0, VW - W2 * cout)))

    wband = jnp.stack([band(p["w1"]), band(p["w2"]),
                       band(p["w3"]), band(p["w4"])]).astype(jnp.bfloat16)

    def row(v, c):  # per-channel vector -> (1, VW) lane-tiled (x*C + c layout)
        r = jnp.tile(jnp.reshape(v, (1, c)).astype(jnp.float32), (1, W2))
        return jnp.pad(r, ((0, 0), (0, VW - W2 * c)))

    lw_t = jnp.tile(p["lw"].astype(jnp.float32), (1, W2))       # (ED, W2*C_out)
    lw_t = jnp.pad(lw_t, ((0, 0), (0, VW - W2 * C_out)))

    vecs = jnp.concatenate(
        [row(p["g1w"], C_in), row(p["g1b"], C_in),
         row(p["g2w"], C_in), row(p["g2b"], C_in),
         row(p["g3w"], C_out), row(p["g3b"], C_out),
         row(p["g4w"], C_out), row(p["g4b"], C_out),
         row(p["lb"], C_out),
         lw_t], axis=0)                                          # (9+ED, VW)

    return {"wband": wband, "vecs": vecs,
            "C_in": C_in, "C_out": C_out, "emb_dim": emb_dim}


def down_pallas(x_nchw, t, prep):
    N, C_in, H, W = x_nchw.shape
    assert H % 2 == 0 and W % 2 == 0 and C_in == prep["C_in"]
    H2, W2 = H // 2, W // 2
    C_out = prep["C_out"]
    emb_dim = prep["emb_dim"]
    assert t.shape == (N, emb_dim)
    WCI, WCO = W2 * C_in, W2 * C_out
    XW = 4 * WCI
    NB = _samples_per_step(N)
    R_LB, R_LW = 8, 9
    wband, vecs = prep["wband"], prep["vecs"]

    # Single fused input swizzle: NCHW -> (N, H2, (dy, dx, x2, c)) lanes, bf16.
    # (max-pool commutes with the monotone bf16 downcast.)
    x_p = (x_nchw.reshape(N, C_in, H2, 2, W2, 2)
           .transpose(0, 2, 3, 5, 4, 1)
           .reshape(N, H2, XW)
           .astype(jnp.bfloat16))

    def kernel(x_ref, wb_ref, vecs_ref, t_ref, out_ref, padc_ref, pado_ref):
        g = pl.program_id(0)

        # Vertical conv padding: zero only the 1-row top/bottom borders of the
        # two scratches, once per grid step (interiors are fully overwritten
        # before every read; horizontal borders are unnecessary because the
        # banded weights already drop out-of-image dx taps).
        padc_ref[0:1, :] = jnp.zeros((1, WCI), jnp.bfloat16)
        padc_ref[H2 + 1:H2 + 2, :] = jnp.zeros((1, WCI), jnp.bfloat16)
        pado_ref[0:1, :] = jnp.zeros((1, WCO), jnp.bfloat16)
        pado_ref[H2 + 1:H2 + 2, :] = jnp.zeros((1, WCO), jnp.bfloat16)

        # Pre-lane-tiled per-channel parameters (one packed f32 input), loaded once.
        g1w = vecs_ref[0:1, 0:WCI]
        g1b = vecs_ref[1:2, 0:WCI]
        g2w = vecs_ref[2:3, 0:WCI]
        g2b = vecs_ref[3:4, 0:WCI]
        g3w = vecs_ref[4:5, 0:WCO]
        g3b = vecs_ref[5:6, 0:WCO]
        g4w = vecs_ref[6:7, 0:WCO]
        g4b = vecs_ref[7:8, 0:WCO]
        lb_t = vecs_ref[R_LB:R_LB + 1, 0:WCO]
        lw_t = vecs_ref[R_LW:R_LW + emb_dim, 0:WCO]

        def conv3x3(pad_ref, cidx, kdim, ndim):
            # Banded conv: out[y, x*cout+co] = sum_dy pad[y+dy, :] @ band[dy].
            h = jnp.dot(pad_ref[0:H2, :], wb_ref[cidx, 0, 0:kdim, 0:ndim],
                        preferred_element_type=jnp.float32)
            h = h + jnp.dot(pad_ref[1:H2 + 1, :], wb_ref[cidx, 1, 0:kdim, 0:ndim],
                            preferred_element_type=jnp.float32)
            h = h + jnp.dot(pad_ref[2:H2 + 2, :], wb_ref[cidx, 2, 0:kdim, 0:ndim],
                            preferred_element_type=jnp.float32)
            return h                                            # (H2, ndim) f32

        def groupnorm(y, gw, gb):
            # GroupNorm(num_groups=1): per-sample stats over all (C, H2, W2),
            # biased variance, eps=1e-5, per-channel affine (gw/gb pre-tiled).
            inv_n = 1.0 / (y.shape[0] * y.shape[1])
            s1 = jnp.sum(y, keepdims=True)
            s2 = jnp.sum(y * y, keepdims=True)
            mu = s1 * inv_n
            var = jnp.maximum(s2 * inv_n - mu * mu, 0.0)
            return (y - mu) * jax.lax.rsqrt(var + 1e-5) * gw + gb

        def gelu(v):
            # tanh approximation -> EUP slot (delta vs exact erf << tolerance).
            return jax.nn.gelu(v, approximate=True)

        for n in range(NB):  # static unroll over the samples of this grid step
            # --- MaxPool2d(2): the 4 pool taps are the 4 lane groups of the
            # --- pre-swizzled input -> 3 lane slices + 3 maxes, no relayout.
            xg = x_ref[n]                                       # (H2, 4*WCI) bf16
            pooled = jnp.maximum(
                jnp.maximum(xg[:, 0:WCI], xg[:, WCI:2 * WCI]),
                jnp.maximum(xg[:, 2 * WCI:3 * WCI], xg[:, 3 * WCI:4 * WCI]))
            x2 = pooled.astype(jnp.float32)                     # (H2, WCI)

            # --- DoubleConv(C_in, C_in, residual=True) ---
            padc_ref[1:H2 + 1, :] = pooled
            h = gelu(groupnorm(conv3x3(padc_ref, 0, WCI, WCI), g1w, g1b))
            padc_ref[1:H2 + 1, :] = h.astype(jnp.bfloat16)
            h = groupnorm(conv3x3(padc_ref, 1, WCI, WCI), g2w, g2b)
            y1 = gelu(x2 + h)

            # --- DoubleConv(C_in, C_out) ---
            padc_ref[1:H2 + 1, :] = y1.astype(jnp.bfloat16)
            h = gelu(groupnorm(conv3x3(padc_ref, 2, WCI, WCO), g3w, g3b))
            pado_ref[1:H2 + 1, :] = h.astype(jnp.bfloat16)
            h = groupnorm(conv3x3(pado_ref, 3, WCO, WCO), g4w, g4b)

            # --- time embedding: SiLU -> Linear (pre-lane-tiled weights) ---
            tv = t_ref[pl.ds(g * NB + n, 1), :]                 # (1, ED) f32
            emb = jnp.dot(jax.nn.silu(tv), lw_t,
                          preferred_element_type=jnp.float32) + lb_t  # (1, WCO)

            out_ref[n] = h + emb                                # (H2, WCO) f32

    out = pl.pallas_call(
        kernel,
        grid=(N // NB,),
        in_specs=[pl.BlockSpec((NB, H2, XW), lambda g: (g, 0, 0)),
                  pl.BlockSpec(wband.shape, lambda g: (0, 0, 0, 0)),
                  pl.BlockSpec(vecs.shape, lambda g: (0, 0)),
                  pl.BlockSpec((N, emb_dim), lambda g: (0, 0))],
        out_specs=pl.BlockSpec((NB, H2, WCO), lambda g: (g, 0, 0)),
        out_shape=jax.ShapeDtypeStruct((N, H2, WCO), jnp.float32),
        scratch_shapes=[pltpu.VMEM((H2 + 2, WCI), jnp.bfloat16),
                        pltpu.VMEM((H2 + 2, WCO), jnp.bfloat16)],
        compiler_params=pltpu.CompilerParams(
            dimension_semantics=("parallel",),
            vmem_limit_bytes=32 * 1024 * 1024),
    )(x_p, wband, vecs, t.astype(jnp.float32))

    out = out.reshape(N, H2, W2, C_out)
    return jnp.transpose(out, (0, 3, 1, 2))  # back to NCHW


# ----------------------- pure-JAX reference (for checking) -----------------------
def down_ref(x_nchw, t, p):
    x = jnp.transpose(x_nchw, (0, 2, 3, 1)).astype(jnp.float32)
    N, H, W, C = x.shape
    x = jnp.max(x.reshape(N, H // 2, 2, W // 2, 2, C), axis=(2, 4))

    def conv(v, w):
        return jax.lax.conv_general_dilated(
            v, w, window_strides=(1, 1), padding="SAME",
            dimension_numbers=("NHWC", "HWIO", "NHWC"))

    def gn(v, g, b):
        mu = jnp.mean(v, axis=(1, 2, 3), keepdims=True)
        var = jnp.mean((v - mu) ** 2, axis=(1, 2, 3), keepdims=True)
        vn = (v - mu) * jax.lax.rsqrt(var + 1e-5)
        return vn * g.reshape(1, 1, 1, -1) + b.reshape(1, 1, 1, -1)

    def gelu(v):  # PyTorch nn.GELU default = exact erf
        return jax.nn.gelu(v, approximate=False)

    h = gelu(gn(conv(x, p["w1"]), p["g1w"], p["g1b"]))
    h = gn(conv(h, p["w2"]), p["g2w"], p["g2b"])
    y1 = gelu(x + h)
    h = gelu(gn(conv(y1, p["w3"]), p["g3w"], p["g3b"]))
    h = gn(conv(h, p["w4"]), p["g4w"], p["g4b"])
    emb = jax.nn.silu(t) @ p["lw"] + p["lb"]          # (N, C_out)
    out = h + emb[:, None, None, :]
    return jnp.transpose(out, (0, 3, 1, 2))


def init_params(key, c_in, c_out, emb_dim=ED):
    k1, k2, k3, k4, k5, k6 = jax.random.split(key, 6)

    def conv_w(k, ci, co):
        return jax.random.normal(k, (3, 3, ci, co), jnp.float32) * (9 * ci) ** -0.5

    return {
        "w1": conv_w(k1, c_in, c_in),
        "w2": conv_w(k2, c_in, c_in),
        "w3": conv_w(k3, c_in, c_out),
        "w4": conv_w(k4, c_out, c_out),
        # GroupNorm affine params (PyTorch default init: weight=1, bias=0)
        "g1w": jnp.ones((1, c_in), jnp.float32), "g1b": jnp.zeros((1, c_in), jnp.float32),
        "g2w": jnp.ones((1, c_in), jnp.float32), "g2b": jnp.zeros((1, c_in), jnp.float32),
        "g3w": jnp.ones((1, c_out), jnp.float32), "g3b": jnp.zeros((1, c_out), jnp.float32),
        "g4w": jnp.ones((1, c_out), jnp.float32), "g4b": jnp.zeros((1, c_out), jnp.float32),
        # Linear(emb_dim, c_out): stored transposed (emb_dim, c_out) for y = t @ W + b
        "lw": jax.random.normal(k5, (emb_dim, c_out), jnp.float32) * emb_dim ** -0.5,
        "lb": jax.random.normal(k6, (1, c_out), jnp.float32) * 0.1,
    }


if __name__ == "__main__":
    N, C_in, C_out, H, W = 2, 4, 8, 16, 16
    key = jax.random.PRNGKey(0)
    kx, kt, kp = jax.random.split(key, 3)
    x = jax.random.normal(kx, (N, C_in, H, W), jnp.float32)
    t = jax.random.normal(kt, (N, ED), jnp.float32)
    params = init_params(kp, C_in, C_out)

    # One-time parameter prep (banded conv weights, lane-tiled small params).
    prep = prepare_down_params(params, (H, W))

    out = down_pallas(x, t, prep)
    out = jax.block_until_ready(out)

    ref = down_ref(x, t, params)
    assert out.shape == (N, C_out, H // 2, W // 2), out.shape
    err = float(jnp.max(jnp.abs(out - ref)))
    # Convs use bf16 operands (f32 accumulation) + tanh GELU; tolerance sized accordingly.
    assert err < 5e-2, f"max abs error too large: {err}"
    print("KERNEL_OK")
</pallas_src>

<mosaic_0001>
module attributes {stable_mosaic.version = 11 : i64} {
  func.func @kernel(%arg0: i32, %arg1: memref<2x8x128xbf16, #tpu.memory_space<vmem>>, %arg2: memref<4x3x64x64xbf16, #tpu.memory_space<vmem>>, %arg3: memref<17x64xf32, #tpu.memory_space<vmem>>, %arg4: memref<2x8xf32, #tpu.memory_space<vmem>>, %arg5: memref<2x8x64xf32, #tpu.memory_space<vmem>>, %arg6: memref<10x32xbf16, #tpu.memory_space<vmem>>, %arg7: memref<10x64xbf16, #tpu.memory_space<vmem>>) attributes {dimension_semantics = [#tpu.dimension_semantics<parallel>], iteration_bounds = array<i64: 1>, scalar_prefetch = 0 : i64, scratch_operands = 2 : i64, tpu.core_type = #tpu.core_type<tc>, window_params = [{transform_indices = @transform_0, window_bounds = array<i64: 2, 8, 128>}, {pipeline_mode = #tpu.pipeline_mode<synchronous>, transform_indices = @transform_1, window_bounds = array<i64: 4, 3, 64, 64>}, {pipeline_mode = #tpu.pipeline_mode<synchronous>, transform_indices = @transform_2, window_bounds = array<i64: 17, 64>}, {pipeline_mode = #tpu.pipeline_mode<synchronous>, transform_indices = @transform_3, window_bounds = array<i64: 2, 8>}, {transform_indices = @transform_4, window_bounds = array<i64: 2, 8, 64>}]} {
    %cst = arith.constant 0.000000e+00 : bf16
    %0 = vector.broadcast %cst : bf16 to vector<1x32xbf16>
    %c0 = arith.constant 0 : index
    %c0_0 = arith.constant 0 : index
    %1 = vector.load %arg6[%c0, %c0_0] : memref<10x32xbf16, #tpu.memory_space<vmem>>, vector<1x32xbf16>
    tpu.vector_store %arg6[%c0, %c0_0], %0 {strides = array<i32>} : memref<10x32xbf16, #tpu.memory_space<vmem>>, vector<1x32xbf16>,
    %cst_1 = arith.constant 0.000000e+00 : bf16
    %2 = vector.broadcast %cst_1 : bf16 to vector<1x32xbf16>
    %c9 = arith.constant 9 : index
    %c0_2 = arith.constant 0 : index
    %3 = vector.load %arg6[%c9, %c0_2] : memref<10x32xbf16, #tpu.memory_space<vmem>>, vector<1x32xbf16>
    tpu.vector_store %arg6[%c9, %c0_2], %2 {strides = array<i32>} : memref<10x32xbf16, #tpu.memory_space<vmem>>, vector<1x32xbf16>,
    %cst_3 = arith.constant 0.000000e+00 : bf16
    %4 = vector.broadcast %cst_3 : bf16 to vector<1x64xbf16>
    %c0_4 = arith.constant 0 : index
    %c0_5 = arith.constant 0 : index
    %5 = vector.load %arg7[%c0_4, %c0_5] : memref<10x64xbf16, #tpu.memory_space<vmem>>, vector<1x64xbf16>
    tpu.vector_store %arg7[%c0_4, %c0_5], %4 {strides = array<i32>} : memref<10x64xbf16, #tpu.memory_space<vmem>>, vector<1x64xbf16>,
    %cst_6 = arith.constant 0.000000e+00 : bf16
    %6 = vector.broadcast %cst_6 : bf16 to vector<1x64xbf16>
    %c9_7 = arith.constant 9 : index
    %c0_8 = arith.constant 0 : index
    %7 = vector.load %arg7[%c9_7, %c0_8] : memref<10x64xbf16, #tpu.memory_space<vmem>>, vector<1x64xbf16>
    tpu.vector_store %arg7[%c9_7, %c0_8], %6 {strides = array<i32>} : memref<10x64xbf16, #tpu.memory_space<vmem>>, vector<1x64xbf16>,
    %c0_9 = arith.constant 0 : index
    %c0_10 = arith.constant 0 : index
    %8 = vector.load %arg3[%c0_9, %c0_10] : memref<17x64xf32, #tpu.memory_space<vmem>>, vector<1x32xf32>
    %c1 = arith.constant 1 : index
    %c0_11 = arith.constant 0 : index
    %9 = vector.load %arg3[%c1, %c0_11] : memref<17x64xf32, #tpu.memory_space<vmem>>, vector<1x32xf32>
    %c2 = arith.constant 2 : index
    %c0_12 = arith.constant 0 : index
    %10 = vector.load %arg3[%c2, %c0_12] : memref<17x64xf32, #tpu.memory_space<vmem>>, vector<1x32xf32>
    %c3 = arith.constant 3 : index
    %c0_13 = arith.constant 0 : index
    %11 = vector.load %arg3[%c3, %c0_13] : memref<17x64xf32, #tpu.memory_space<vmem>>, vector<1x32xf32>
    %c4 = arith.constant 4 : index
    %c0_14 = arith.constant 0 : index
    %12 = vector.load %arg3[%c4, %c0_14] : memref<17x64xf32, #tpu.memory_space<vmem>>, vector<1x64xf32>
    %c5 = arith.constant 5 : index
    %c0_15 = arith.constant 0 : index
    %13 = vector.load %arg3[%c5, %c0_15] : memref<17x64xf32, #tpu.memory_space<vmem>>, vector<1x64xf32>
    %c6 = arith.constant 6 : index
    %c0_16 = arith.constant 0 : index
    %14 = vector.load %arg3[%c6, %c0_16] : memref<17x64xf32, #tpu.memory_space<vmem>>, vector<1x64xf32>
    %c7 = arith.constant 7 : index
    %c0_17 = arith.constant 0 : index
    %15 = vector.load %arg3[%c7, %c0_17] : memref<17x64xf32, #tpu.memory_space<vmem>>, vector<1x64xf32>
    %c8 = arith.constant 8 : index
    %c0_18 = arith.constant 0 : index
    %16 = vector.load %arg3[%c8, %c0_18] : memref<17x64xf32, #tpu.memory_space<vmem>>, vector<1x64xf32>
    %c9_19 = arith.constant 9 : index
    %c0_20 = arith.constant 0 : index
    %17 = vector.load %arg3[%c9_19, %c0_20] : memref<17x64xf32, #tpu.memory_space<vmem>>, vector<8x64xf32>
    %c0_21 = arith.constant 0 : index
    %c0_22 = arith.constant 0 : index
    %c0_23 = arith.constant 0 : index
    %18 = vector.load %arg1[%c0_21, %c0_22, %c0_23] : memref<2x8x128xbf16, #tpu.memory_space<vmem>>, vector<1x8x128xbf16>
    %19 = vector.shape_cast %18 : vector<1x8x128xbf16> to vector<8x128xbf16>
    %20 = vector.extract_strided_slice %19 {offsets = [0, 0], sizes = [8, 32], strides = [1, 1]} : vector<8x128xbf16> to vector<8x32xbf16>
    %21 = vector.extract_strided_slice %19 {offsets = [0, 32], sizes = [8, 32], strides = [1, 1]} : vector<8x128xbf16> to vector<8x32xbf16>
    %22 = arith.maximumf %20, %21 : vector<8x32xbf16>
    %23 = vector.extract_strided_slice %19 {offsets = [0, 64], sizes = [8, 32], strides = [1, 1]} : vector<8x128xbf16> to vector<8x32xbf16>
    %24 = vector.extract_strided_slice %19 {offsets = [0, 96], sizes = [8, 32], strides = [1, 1]} : vector<8x128xbf16> to vector<8x32xbf16>
    %25 = arith.maximumf %23, %24 : vector<8x32xbf16>
    %26 = arith.maximumf %22, %25 : vector<8x32xbf16>
    %27 = arith.extf %26 : vector<8x32xbf16> to vector<8x32xf32>
    %c1_24 = arith.constant 1 : index
    %c0_25 = arith.constant 0 : index
    %28 = vector.load %arg6[%c1_24, %c0_25] : memref<10x32xbf16, #tpu.memory_space<vmem>>, vector<8x32xbf16>
    tpu.vector_store %arg6[%c1_24, %c0_25], %26 {strides = array<i32>} : memref<10x32xbf16, #tpu.memory_space<vmem>>, vector<8x32xbf16>,
    %c0_26 = arith.constant 0 : index
    %c0_27 = arith.constant 0 : index
    %29 = vector.load %arg6[%c0_26, %c0_27] : memref<10x32xbf16, #tpu.memory_space<vmem>>, vector<8x32xbf16>
    %c0_28 = arith.constant 0 : index
    %c0_29 = arith.constant 0 : index
    %c0_30 = arith.constant 0 : index
    %c0_31 = arith.constant 0 : index
    %30 = vector.load %arg2[%c0_28, %c0_29, %c0_30, %c0_31] : memref<4x3x64x64xbf16, #tpu.memory_space<vmem>>, vector<1x1x32x32xbf16>
    %31 = vector.shape_cast %30 : vector<1x1x32x32xbf16> to vector<32x32xbf16>
    %cst_32 = arith.constant dense<0.000000e+00> : vector<8x32xf32>
    %32 = tpu.matmul %29, %31, %cst_32 {dimension_numbers = #tpu.dot_dimension_numbers<[1], [0], [0], [1], [0, 0, 1, 1], [], []>} : vector<8x32xbf16>, vector<32x32xbf16>, vector<8x32xf32> -> vector<8x32xf32>
    %c1_33 = arith.constant 1 : index
    %c0_34 = arith.constant 0 : index
    %33 = vector.load %arg6[%c1_33, %c0_34] : memref<10x32xbf16, #tpu.memory_space<vmem>>, vector<8x32xbf16>
    %c0_35 = arith.constant 0 : index
    %c1_36 = arith.constant 1 : index
    %c0_37 = arith.constant 0 : index
    %c0_38 = arith.constant 0 : index
    %34 = vector.load %arg2[%c0_35, %c1_36, %c0_37, %c0_38] : memref<4x3x64x64xbf16, #tpu.memory_space<vmem>>, vector<1x1x32x32xbf16>
    %35 = vector.shape_cast %34 : vector<1x1x32x32xbf16> to vector<32x32xbf16>
    %cst_39 = arith.constant dense<0.000000e+00> : vector<8x32xf32>
    %36 = tpu.matmul %33, %35, %cst_39 {dimension_numbers = #tpu.dot_dimension_numbers<[1], [0], [0], [1], [0, 0, 1, 1], [], []>} : vector<8x32xbf16>, vector<32x32xbf16>, vector<8x32xf32> -> vector<8x32xf32>
    %37 = arith.addf %32, %36 : vector<8x32xf32>
    %c2_40 = arith.constant 2 : index
    %c0_41 = arith.constant 0 : index
    %38 = vector.load %arg6[%c2_40, %c0_41] : memref<10x32xbf16, #tpu.memory_space<vmem>>, vector<8x32xbf16>
    %c0_42 = arith.constant 0 : index
    %c2_43 = arith.constant 2 : index
    %c0_44 = arith.constant 0 : index
    %c0_45 = arith.constant 0 : index
    %39 = vector.load %arg2[%c0_42, %c2_43, %c0_44, %c0_45] : memref<4x3x64x64xbf16, #tpu.memory_space<vmem>>, vector<1x1x32x32xbf16>
    %40 = vector.shape_cast %39 : vector<1x1x32x32xbf16> to vector<32x32xbf16>
    %cst_46 = arith.constant dense<0.000000e+00> : vector<8x32xf32>
    %41 = tpu.matmul %38, %40, %cst_46 {dimension_numbers = #tpu.dot_dimension_numbers<[1], [0], [0], [1], [0, 0, 1, 1], [], []>} : vector<8x32xbf16>, vector<32x32xbf16>, vector<8x32xf32> -> vector<8x32xf32>
    %42 = arith.addf %37, %41 : vector<8x32xf32>
    %43 = vector.shape_cast %42 : vector<8x32xf32> to vector<1x8x32xf32>
    %cst_47 = arith.constant dense<0.000000e+00> : vector<1xf32>
    %44 = vector.multi_reduction <add>, %43, %cst_47 [1, 2] : vector<1x8x32xf32> to vector<1xf32>
    %45 = vector.shape_cast %44 : vector<1xf32> to vector<1x1x1xf32>
    %46 = vector.extract %45[0, 0, 0] : f32 from vector<1x1x1xf32>
    %47 = vector.broadcast %46 : f32 to vector<1x1xf32>
    %48 = arith.mulf %42, %42 : vector<8x32xf32>
    %49 = vector.shape_cast %48 : vector<8x32xf32> to vector<1x8x32xf32>
    %cst_48 = arith.constant dense<0.000000e+00> : vector<1xf32>
    %50 = vector.multi_reduction <add>, %49, %cst_48 [1, 2] : vector<1x8x32xf32> to vector<1xf32>
    %51 = vector.shape_cast %50 : vector<1xf32> to vector<1x1x1xf32>
    %52 = vector.extract %51[0, 0, 0] : f32 from vector<1x1x1xf32>
    %53 = vector.broadcast %52 : f32 to vector<1x1xf32>
    %cst_49 = arith.constant 3.906250e-03 : f32
    %54 = vector.broadcast %cst_49 : f32 to vector<1x1xf32>
    %55 = arith.mulf %47, %54 : vector<1x1xf32>
    %cst_50 = arith.constant 3.906250e-03 : f32
    %56 = vector.broadcast %cst_50 : f32 to vector<1x1xf32>
    %57 = arith.mulf %53, %56 : vector<1x1xf32>
    %58 = arith.mulf %55, %55 : vector<1x1xf32>
    %59 = arith.subf %57, %58 : vector<1x1xf32>
    %cst_51 = arith.constant 0.000000e+00 : f32
    %60 = vector.broadcast %cst_51 : f32 to vector<1x1xf32>
    %61 = arith.maximumf %59, %60 : vector<1x1xf32>
    %62 = vector.broadcast %55 : vector<1x1xf32> to vector<8x32xf32>
    %63 = arith.subf %42, %62 : vector<8x32xf32>
    %cst_52 = arith.constant 9.99999974E-6 : f32
    %64 = vector.broadcast %cst_52 : f32 to vector<1x1xf32>
    %65 = arith.addf %61, %64 : vector<1x1xf32>
    %66 = math.rsqrt %65 : vector<1x1xf32>
    %67 = vector.broadcast %66 : vector<1x1xf32> to vector<8x32xf32>
    %68 = arith.mulf %63, %67 : vector<8x32xf32>
    %69 = vector.broadcast %8 : vector<1x32xf32> to vector<8x32xf32>
    %70 = arith.mulf %68, %69 : vector<8x32xf32>
    %71 = vector.broadcast %9 : vector<1x32xf32> to vector<8x32xf32>
    %72 = arith.addf %70, %71 : vector<8x32xf32>
    %73 = arith.mulf %72, %72 : vector<8x32xf32>
    %74 = arith.mulf %72, %73 : vector<8x32xf32>
    %cst_53 = arith.constant 4.471500e-02 : f32
    %75 = vector.broadcast %cst_53 : f32 to vector<8x32xf32>
    %76 = arith.mulf %75, %74 : vector<8x32xf32>
    %77 = arith.addf %72, %76 : vector<8x32xf32>
    %cst_54 = arith.constant 0.797884583 : f32
    %78 = vector.broadcast %cst_54 : f32 to vector<8x32xf32>
    %79 = arith.mulf %78, %77 : vector<8x32xf32>
    %80 = math.tanh %79 : vector<8x32xf32>
    %cst_55 = arith.constant 1.000000e+00 : f32
    %81 = vector.broadcast %cst_55 : f32 to vector<8x32xf32>
    %82 = arith.addf %81, %80 : vector<8x32xf32>
    %cst_56 = arith.constant 5.000000e-01 : f32
    %83 = vector.broadcast %cst_56 : f32 to vector<8x32xf32>
    %84 = arith.mulf %83, %82 : vector<8x32xf32>
    %85 = arith.mulf %72, %84 : vector<8x32xf32>
    %86 = arith.truncf %85 : vector<8x32xf32> to vector<8x32xbf16>
    %c1_57 = arith.constant 1 : index
    %c0_58 = arith.constant 0 : index
    %87 = vector.load %arg6[%c1_57, %c0_58] : memref<10x32xbf16, #tpu.memory_space<vmem>>, vector<8x32xbf16>
    tpu.vector_store %arg6[%c1_57, %c0_58], %86 {strides = array<i32>} : memref<10x32xbf16, #tpu.memory_space<vmem>>, vector<8x32xbf16>,
    %c0_59 = arith.constant 0 : index
    %c0_60 = arith.constant 0 : index
    %88 = vector.load %arg6[%c0_59, %c0_60] : memref<10x32xbf16, #tpu.memory_space<vmem>>, vector<8x32xbf16>
    %c1_61 = arith.constant 1 : index
    %c0_62 = arith.constant 0 : index
    %c0_63 = arith.constant 0 : index
    %c0_64 = arith.constant 0 : index
    %89 = vector.load %arg2[%c1_61, %c0_62, %c0_63, %c0_64] : memref<4x3x64x64xbf16, #tpu.memory_space<vmem>>, vector<1x1x32x32xbf16>
    %90 = vector.shape_cast %89 : vector<1x1x32x32xbf16> to vector<32x32xbf16>
    %cst_65 = arith.constant dense<0.000000e+00> : vector<8x32xf32>
    %91 = tpu.matmul %88, %90, %cst_65 {dimension_numbers = #tpu.dot_dimension_numbers<[1], [0], [0], [1], [0, 0, 1, 1], [], []>} : vector<8x32xbf16>, vector<32x32xbf16>, vector<8x32xf32> -> vector<8x32xf32>
    %c1_66 = arith.constant 1 : index
    %c0_67 = arith.constant 0 : index
    %92 = vector.load %arg6[%c1_66, %c0_67] : memref<10x32xbf16, #tpu.memory_space<vmem>>, vector<8x32xbf16>
    %c1_68 = arith.constant 1 : index
    %c1_69 = arith.constant 1 : index
    %c0_70 = arith.constant 0 : index
    %c0_71 = arith.constant 0 : index
    %93 = vector.load %arg2[%c1_68, %c1_69, %c0_70, %c0_71] : memref<4x3x64x64xbf16, #tpu.memory_space<vmem>>, vector<1x1x32x32xbf16>
    %94 = vector.shape_cast %93 : vector<1x1x32x32xbf16> to vector<32x32xbf16>
    %cst_72 = arith.constant dense<0.000000e+00> : vector<8x32xf32>
    %95 = tpu.matmul %92, %94, %cst_72 {dimension_numbers = #tpu.dot_dimension_numbers<[1], [0], [0], [1], [0, 0, 1, 1], [], []>} : vector<8x32xbf16>, vector<32x32xbf16>, vector<8x32xf32> -> vector<8x32xf32>
    %96 = arith.addf %91, %95 : vector<8x32xf32>
    %c2_73 = arith.constant 2 : index
    %c0_74 = arith.constant 0 : index
    %97 = vector.load %arg6[%c2_73, %c0_74] : memref<10x32xbf16, #tpu.memory_space<vmem>>, vector<8x32xbf16>
    %c1_75 = arith.constant 1 : index
    %c2_76 = arith.constant 2 : index
    %c0_77 = arith.constant 0 : index
    %c0_78 = arith.constant 0 : index
    %98 = vector.load %arg2[%c1_75, %c2_76, %c0_77, %c0_78] : memref<4x3x64x64xbf16, #tpu.memory_space<vmem>>, vector<1x1x32x32xbf16>
    %99 = vector.shape_cast %98 : vector<1x1x32x32xbf16> to vector<32x32xbf16>
    %cst_79 = arith.constant dense<0.000000e+00> : vector<8x32xf32>
    %100 = tpu.matmul %97, %99, %cst_79 {dimension_numbers = #tpu.dot_dimension_numbers<[1], [0], [0], [1], [0, 0, 1, 1], [], []>} : vector<8x32xbf16>, vector<32x32xbf16>, vector<8x32xf32> -> vector<8x32xf32>
    %101 = arith.addf %96, %100 : vector<8x32xf32>
    %102 = vector.shape_cast %101 : vector<8x32xf32> to vector<1x8x32xf32>
    %cst_80 = arith.constant dense<0.000000e+00> : vector<1xf32>
    %103 = vector.multi_reduction <add>, %102, %cst_80 [1, 2] : vector<1x8x32xf32> to vector<1xf32>
    %104 = vector.shape_cast %103 : vector<1xf32> to vector<1x1x1xf32>
    %105 = vector.extract %104[0, 0, 0] : f32 from vector<1x1x1xf32>
    %106 = vector.broadcast %105 : f32 to vector<1x1xf32>
    %107 = arith.mulf %101, %101 : vector<8x32xf32>
    %108 = vector.shape_cast %107 : vector<8x32xf32> to vector<1x8x32xf32>
    %cst_81 = arith.constant dense<0.000000e+00> : vector<1xf32>
    %109 = vector.multi_reduction <add>, %108, %cst_81 [1, 2] : vector<1x8x32xf32> to vector<1xf32>
    %110 = vector.shape_cast %109 : vector<1xf32> to vector<1x1x1xf32>
    %111 = vector.extract %110[0, 0, 0] : f32 from vector<1x1x1xf32>
    %112 = vector.broadcast %111 : f32 to vector<1x1xf32>
    %cst_82 = arith.constant 3.906250e-03 : f32
    %113 = vector.broadcast %cst_82 : f32 to vector<1x1xf32>
    %114 = arith.mulf %106, %113 : vector<1x1xf32>
    %cst_83 = arith.constant 3.906250e-03 : f32
    %115 = vector.broadcast %cst_83 : f32 to vector<1x1xf32>
    %116 = arith.mulf %112, %115 : vector<1x1xf32>
    %117 = arith.mulf %114, %114 : vector<1x1xf32>
    %118 = arith.subf %116, %117 : vector<1x1xf32>
    %cst_84 = arith.constant 0.000000e+00 : f32
    %119 = vector.broadcast %cst_84 : f32 to vector<1x1xf32>
    %120 = arith.maximumf %118, %119 : vector<1x1xf32>
    %121 = vector.broadcast %114 : vector<1x1xf32> to vector<8x32xf32>
    %122 = arith.subf %101, %121 : vector<8x32xf32>
    %cst_85 = arith.constant 9.99999974E-6 : f32
    %123 = vector.broadcast %cst_85 : f32 to vector<1x1xf32>
    %124 = arith.addf %120, %123 : vector<1x1xf32>
    %125 = math.rsqrt %124 : vector<1x1xf32>
    %126 = vector.broadcast %125 : vector<1x1xf32> to vector<8x32xf32>
    %127 = arith.mulf %122, %126 : vector<8x32xf32>
    %128 = vector.broadcast %10 : vector<1x32xf32> to vector<8x32xf32>
    %129 = arith.mulf %127, %128 : vector<8x32xf32>
    %130 = vector.broadcast %11 : vector<1x32xf32> to vector<8x32xf32>
    %131 = arith.addf %129, %130 : vector<8x32xf32>
    %132 = arith.addf %27, %131 : vector<8x32xf32>
    %133 = arith.mulf %132, %132 : vector<8x32xf32>
    %134 = arith.mulf %132, %133 : vector<8x32xf32>
    %cst_86 = arith.constant 4.471500e-02 : f32
    %135 = vector.broadcast %cst_86 : f32 to vector<8x32xf32>
    %136 = arith.mulf %135, %134 : vector<8x32xf32>
    %137 = arith.addf %132, %136 : vector<8x32xf32>
    %cst_87 = arith.constant 0.797884583 : f32
    %138 = vector.broadcast %cst_87 : f32 to vector<8x32xf32>
    %139 = arith.mulf %138, %137 : vector<8x32xf32>
    %140 = math.tanh %139 : vector<8x32xf32>
    %cst_88 = arith.constant 1.000000e+00 : f32
    %141 = vector.broadcast %cst_88 : f32 to vector<8x32xf32>
    %142 = arith.addf %141, %140 : vector<8x32xf32>
    %cst_89 = arith.constant 5.000000e-01 : f32
    %143 = vector.broadcast %cst_89 : f32 to vector<8x32xf32>
    %144 = arith.mulf %143, %142 : vector<8x32xf32>
    %145 = arith.mulf %132, %144 : vector<8x32xf32>
    %146 = arith.truncf %145 : vector<8x32xf32> to vector<8x32xbf16>
    %c1_90 = arith.constant 1 : index
    %c0_91 = arith.constant 0 : index
    %147 = vector.load %arg6[%c1_90, %c0_91] : memref<10x32xbf16, #tpu.memory_space<vmem>>, vector<8x32xbf16>
    tpu.vector_store %arg6[%c1_90, %c0_91], %146 {strides = array<i32>} : memref<10x32xbf16, #tpu.memory_space<vmem>>, vector<8x32xbf16>,
    %c0_92 = arith.constant 0 : index
    %c0_93 = arith.constant 0 : index
    %148 = vector.load %arg6[%c0_92, %c0_93] : memref<10x32xbf16, #tpu.memory_space<vmem>>, vector<8x32xbf16>
    %c2_94 = arith.constant 2 : index
    %c0_95 = arith.constant 0 : index
    %c0_96 = arith.constant 0 : index
    %c0_97 = arith.constant 0 : index
    %149 = vector.load %arg2[%c2_94, %c0_95, %c0_96, %c0_97] : memref<4x3x64x64xbf16, #tpu.memory_space<vmem>>, vector<1x1x32x64xbf16>
    %150 = vector.shape_cast %149 : vector<1x1x32x64xbf16> to vector<32x64xbf16>
    %cst_98 = arith.constant dense<0.000000e+00> : vector<8x64xf32>
    %151 = tpu.matmul %148, %150, %cst_98 {dimension_numbers = #tpu.dot_dimension_numbers<[1], [0], [0], [1], [0, 0, 1, 1], [], []>} : vector<8x32xbf16>, vector<32x64xbf16>, vector<8x64xf32> -> vector<8x64xf32>
    %c1_99 = arith.constant 1 : index
    %c0_100 = arith.constant 0 : index
    %152 = vector.load %arg6[%c1_99, %c0_100] : memref<10x32xbf16, #tpu.memory_space<vmem>>, vector<8x32xbf16>
    %c2_101 = arith.constant 2 : index
    %c1_102 = arith.constant 1 : index
    %c0_103 = arith.constant 0 : index
    %c0_104 = arith.constant 0 : index
    %153 = vector.load %arg2[%c2_101, %c1_102, %c0_103, %c0_104] : memref<4x3x64x64xbf16, #tpu.memory_space<vmem>>, vector<1x1x32x64xbf16>
    %154 = vector.shape_cast %153 : vector<1x1x32x64xbf16> to vector<32x64xbf16>
    %cst_105 = arith.constant dense<0.000000e+00> : vector<8x64xf32>
    %155 = tpu.matmul %152, %154, %cst_105 {dimension_numbers = #tpu.dot_dimension_numbers<[1], [0], [0], [1], [0, 0, 1, 1], [], []>} : vector<8x32xbf16>, vector<32x64xbf16>, vector<8x64xf32> -> vector<8x64xf32>
    %156 = arith.addf %151, %155 : vector<8x64xf32>
    %c2_106 = arith.constant 2 : index
    %c0_107 = arith.constant 0 : index
    %157 = vector.load %arg6[%c2_106, %c0_107] : memref<10x32xbf16, #tpu.memory_space<vmem>>, vector<8x32xbf16>
    %c2_108 = arith.constant 2 : index
    %c2_109 = arith.constant 2 : index
    %c0_110 = arith.constant 0 : index
    %c0_111 = arith.constant 0 : index
    %158 = vector.load %arg2[%c2_108, %c2_109, %c0_110, %c0_111] : memref<4x3x64x64xbf16, #tpu.memory_space<vmem>>, vector<1x1x32x64xbf16>
    %159 = vector.shape_cast %158 : vector<1x1x32x64xbf16> to vector<32x64xbf16>
    %cst_112 = arith.constant dense<0.000000e+00> : vector<8x64xf32>
    %160 = tpu.matmul %157, %159, %cst_112 {dimension_numbers = #tpu.dot_dimension_numbers<[1], [0], [0], [1], [0, 0, 1, 1], [], []>} : vector<8x32xbf16>, vector<32x64xbf16>, vector<8x64xf32> -> vector<8x64xf32>
    %161 = arith.addf %156, %160 : vector<8x64xf32>
    %162 = vector.shape_cast %161 : vector<8x64xf32> to vector<1x8x64xf32>
    %cst_113 = arith.constant dense<0.000000e+00> : vector<1xf32>
    %163 = vector.multi_reduction <add>, %162, %cst_113 [1, 2] : vector<1x8x64xf32> to vector<1xf32>
    %164 = vector.shape_cast %163 : vector<1xf32> to vector<1x1x1xf32>
    %165 = vector.extract %164[0, 0, 0] : f32 from vector<1x1x1xf32>
    %166 = vector.broadcast %165 : f32 to vector<1x1xf32>
    %167 = arith.mulf %161, %161 : vector<8x64xf32>
    %168 = vector.shape_cast %167 : vector<8x64xf32> to vector<1x8x64xf32>
    %cst_114 = arith.constant dense<0.000000e+00> : vector<1xf32>
    %169 = vector.multi_reduction <add>, %168, %cst_114 [1, 2] : vector<1x8x64xf32> to vector<1xf32>
    %170 = vector.shape_cast %169 : vector<1xf32> to vector<1x1x1xf32>
    %171 = vector.extract %170[0, 0, 0] : f32 from vector<1x1x1xf32>
    %172 = vector.broadcast %171 : f32 to vector<1x1xf32>
    %cst_115 = arith.constant 0.001953125 : f32
    %173 = vector.broadcast %cst_115 : f32 to vector<1x1xf32>
    %174 = arith.mulf %166, %173 : vector<1x1xf32>
    %cst_116 = arith.constant 0.001953125 : f32
    %175 = vector.broadcast %cst_116 : f32 to vector<1x1xf32>
    %176 = arith.mulf %172, %175 : vector<1x1xf32>
    %177 = arith.mulf %174, %174 : vector<1x1xf32>
    %178 = arith.subf %176, %177 : vector<1x1xf32>
    %cst_117 = arith.constant 0.000000e+00 : f32
    %179 = vector.broadcast %cst_117 : f32 to vector<1x1xf32>
    %180 = arith.maximumf %178, %179 : vector<1x1xf32>
    %181 = vector.broadcast %174 : vector<1x1xf32> to vector<8x64xf32>
    %182 = arith.subf %161, %181 : vector<8x64xf32>
    %cst_118 = arith.constant 9.99999974E-6 : f32
    %183 = vector.broadcast %cst_118 : f32 to vector<1x1xf32>
    %184 = arith.addf %180, %183 : vector<1x1xf32>
    %185 = math.rsqrt %184 : vector<1x1xf32>
    %186 = vector.broadcast %185 : vector<1x1xf32> to vector<8x64xf32>
    %187 = arith.mulf %182, %186 : vector<8x64xf32>
    %188 = vector.broadcast %12 : vector<1x64xf32> to vector<8x64xf32>
    %189 = arith.mulf %187, %188 : vector<8x64xf32>
    %190 = vector.broadcast %13 : vector<1x64xf32> to vector<8x64xf32>
    %191 = arith.addf %189, %190 : vector<8x64xf32>
    %192 = arith.mulf %191, %191 : vector<8x64xf32>
    %193 = arith.mulf %191, %192 : vector<8x64xf32>
    %cst_119 = arith.constant 4.471500e-02 : f32
    %194 = vector.broadcast %cst_119 : f32 to vector<8x64xf32>
    %195 = arith.mulf %194, %193 : vector<8x64xf32>
    %196 = arith.addf %191, %195 : vector<8x64xf32>
    %cst_120 = arith.constant 0.797884583 : f32
    %197 = vector.broadcast %cst_120 : f32 to vector<8x64xf32>
    %198 = arith.mulf %197, %196 : vector<8x64xf32>
    %199 = math.tanh %198 : vector<8x64xf32>
    %cst_121 = arith.constant 1.000000e+00 : f32
    %200 = vector.broadcast %cst_121 : f32 to vector<8x64xf32>
    %201 = arith.addf %200, %199 : vector<8x64xf32>
    %cst_122 = arith.constant 5.000000e-01 : f32
    %202 = vector.broadcast %cst_122 : f32 to vector<8x64xf32>
    %203 = arith.mulf %202, %201 : vector<8x64xf32>
    %204 = arith.mulf %191, %203 : vector<8x64xf32>
    %205 = arith.truncf %204 : vector<8x64xf32> to vector<8x64xbf16>
    %c1_123 = arith.constant 1 : index
    %c0_124 = arith.constant 0 : index
    %206 = vector.load %arg7[%c1_123, %c0_124] : memref<10x64xbf16, #tpu.memory_space<vmem>>, vector<8x64xbf16>
    tpu.vector_store %arg7[%c1_123, %c0_124], %205 {strides = array<i32>} : memref<10x64xbf16, #tpu.memory_space<vmem>>, vector<8x64xbf16>,
    %c0_125 = arith.constant 0 : index
    %c0_126 = arith.constant 0 : index
    %207 = vector.load %arg7[%c0_125, %c0_126] : memref<10x64xbf16, #tpu.memory_space<vmem>>, vector<8x64xbf16>
    %c3_127 = arith.constant 3 : index
    %c0_128 = arith.constant 0 : index
    %c0_129 = arith.constant 0 : index
    %c0_130 = arith.constant 0 : index
    %208 = vector.load %arg2[%c3_127, %c0_128, %c0_129, %c0_130] : memref<4x3x64x64xbf16, #tpu.memory_space<vmem>>, vector<1x1x64x64xbf16>
    %209 = vector.shape_cast %208 : vector<1x1x64x64xbf16> to vector<64x64xbf16>
    %cst_131 = arith.constant dense<0.000000e+00> : vector<8x64xf32>
    %210 = tpu.matmul %207, %209, %cst_131 {dimension_numbers = #tpu.dot_dimension_numbers<[1], [0], [0], [1], [0, 0, 1, 1], [], []>} : vector<8x64xbf16>, vector<64x64xbf16>, vector<8x64xf32> -> vector<8x64xf32>
    %c1_132 = arith.constant 1 : index
    %c0_133 = arith.constant 0 : index
    %211 = vector.load %arg7[%c1_132, %c0_133] : memref<10x64xbf16, #tpu.memory_space<vmem>>, vector<8x64xbf16>
    %c3_134 = arith.constant 3 : index
    %c1_135 = arith.constant 1 : index
    %c0_136 = arith.constant 0 : index
    %c0_137 = arith.constant 0 : index
    %212 = vector.load %arg2[%c3_134, %c1_135, %c0_136, %c0_137] : memref<4x3x64x64xbf16, #tpu.memory_space<vmem>>, vector<1x1x64x64xbf16>
    %213 = vector.shape_cast %212 : vector<1x1x64x64xbf16> to vector<64x64xbf16>
    %cst_138 = arith.constant dense<0.000000e+00> : vector<8x64xf32>
    %214 = tpu.matmul %211, %213, %cst_138 {dimension_numbers = #tpu.dot_dimension_numbers<[1], [0], [0], [1], [0, 0, 1, 1], [], []>} : vector<8x64xbf16>, vector<64x64xbf16>, vector<8x64xf32> -> vector<8x64xf32>
    %215 = arith.addf %210, %214 : vector<8x64xf32>
    %c2_139 = arith.constant 2 : index
    %c0_140 = arith.constant 0 : index
    %216 = vector.load %arg7[%c2_139, %c0_140] : memref<10x64xbf16, #tpu.memory_space<vmem>>, vector<8x64xbf16>
    %c3_141 = arith.constant 3 : index
    %c2_142 = arith.constant 2 : index
    %c0_143 = arith.constant 0 : index
    %c0_144 = arith.constant 0 : index
    %217 = vector.load %arg2[%c3_141, %c2_142, %c0_143, %c0_144] : memref<4x3x64x64xbf16, #tpu.memory_space<vmem>>, vector<1x1x64x64xbf16>
    %218 = vector.shape_cast %217 : vector<1x1x64x64xbf16> to vector<64x64xbf16>
    %cst_145 = arith.constant dense<0.000000e+00> : vector<8x64xf32>
    %219 = tpu.matmul %216, %218, %cst_145 {dimension_numbers = #tpu.dot_dimension_numbers<[1], [0], [0], [1], [0, 0, 1, 1], [], []>} : vector<8x64xbf16>, vector<64x64xbf16>, vector<8x64xf32> -> vector<8x64xf32>
    %220 = arith.addf %215, %219 : vector<8x64xf32>
    %221 = vector.shape_cast %220 : vector<8x64xf32> to vector<1x8x64xf32>
    %cst_146 = arith.constant dense<0.000000e+00> : vector<1xf32>
    %222 = vector.multi_reduction <add>, %221, %cst_146 [1, 2] : vector<1x8x64xf32> to vector<1xf32>
    %223 = vector.shape_cast %222 : vector<1xf32> to vector<1x1x1xf32>
    %224 = vector.extract %223[0, 0, 0] : f32 from vector<1x1x1xf32>
    %225 = vector.broadcast %224 : f32 to vector<1x1xf32>
    %226 = arith.mulf %220, %220 : vector<8x64xf32>
    %227 = vector.shape_cast %226 : vector<8x64xf32> to vector<1x8x64xf32>
    %cst_147 = arith.constant dense<0.000000e+00> : vector<1xf32>
    %228 = vector.multi_reduction <add>, %227, %cst_147 [1, 2] : vector<1x8x64xf32> to vector<1xf32>
    %229 = vector.shape_cast %228 : vector<1xf32> to vector<1x1x1xf32>
    %230 = vector.extract %229[0, 0, 0] : f32 from vector<1x1x1xf32>
    %231 = vector.broadcast %230 : f32 to vector<1x1xf32>
    %cst_148 = arith.constant 0.001953125 : f32
    %232 = vector.broadcast %cst_148 : f32 to vector<1x1xf32>
    %233 = arith.mulf %225, %232 : vector<1x1xf32>
    %cst_149 = arith.constant 0.001953125 : f32
    %234 = vector.broadcast %cst_149 : f32 to vector<1x1xf32>
    %235 = arith.mulf %231, %234 : vector<1x1xf32>
    %236 = arith.mulf %233, %233 : vector<1x1xf32>
    %237 = arith.subf %235, %236 : vector<1x1xf32>
    %cst_150 = arith.constant 0.000000e+00 : f32
    %238 = vector.broadcast %cst_150 : f32 to vector<1x1xf32>
    %239 = arith.maximumf %237, %238 : vector<1x1xf32>
    %240 = vector.broadcast %233 : vector<1x1xf32> to vector<8x64xf32>
    %241 = arith.subf %220, %240 : vector<8x64xf32>
    %cst_151 = arith.constant 9.99999974E-6 : f32
    %242 = vector.broadcast %cst_151 : f32 to vector<1x1xf32>
    %243 = arith.addf %239, %242 : vector<1x1xf32>
    %244 = math.rsqrt %243 : vector<1x1xf32>
    %245 = vector.broadcast %244 : vector<1x1xf32> to vector<8x64xf32>
    %246 = arith.mulf %241, %245 : vector<8x64xf32>
    %247 = vector.broadcast %14 : vector<1x64xf32> to vector<8x64xf32>
    %248 = arith.mulf %246, %247 : vector<8x64xf32>
    %249 = vector.broadcast %15 : vector<1x64xf32> to vector<8x64xf32>
    %250 = arith.addf %248, %249 : vector<8x64xf32>
    %c2_i32 = arith.constant 2 : i32
    %251 = arith.muli %arg0, %c2_i32 : i32
    %c0_i32 = arith.constant 0 : i32
    %252 = arith.addi %251, %c0_i32 : i32
    %253 = arith.index_cast %252 : i32 to index
    %c0_152 = arith.constant 0 : index
    %254 = vector.load %arg4[%253, %c0_152] : memref<2x8xf32, #tpu.memory_space<vmem>>, vector<1x8xf32>
    %255 = arith.negf %254 : vector<1x8xf32>
    %256 = math.exp %255 : vector<1x8xf32>
    %cst_153 = arith.constant 1.000000e+00 : f32
    %257 = vector.broadcast %cst_153 : f32 to vector<1x8xf32>
    %258 = arith.addf %257, %256 : vector<1x8xf32>
    %259 = arith.divf %257, %258 : vector<1x8xf32>
    %260 = arith.mulf %254, %259 : vector<1x8xf32>
    %cst_154 = arith.constant dense<0.000000e+00> : vector<1x64xf32>
    %261 = tpu.matmul %260, %17, %cst_154 {dimension_numbers = #tpu.dot_dimension_numbers<[1], [0], [0], [1], [0, 0, 1, 1], [], []>} : vector<1x8xf32>, vector<8x64xf32>, vector<1x64xf32> -> vector<1x64xf32>
    %262 = arith.addf %261, %16 : vector<1x64xf32>
    %263 = vector.broadcast %262 : vector<1x64xf32> to vector<8x64xf32>
    %264 = arith.addf %250, %263 : vector<8x64xf32>
    %c0_155 = arith.constant 0 : index
    %c0_156 = arith.constant 0 : index
    %c0_157 = arith.constant 0 : index
    %265 = vector.load %arg5[%c0_155, %c0_156, %c0_157] : memref<2x8x64xf32, #tpu.memory_space<vmem>>, vector<1x8x64xf32>
    %266 = vector.shape_cast %265 : vector<1x8x64xf32> to vector<8x64xf32>
    %267 = vector.shape_cast %264 : vector<8x64xf32> to vector<1x8x64xf32>
    tpu.vector_store %arg5[%c0_155, %c0_156, %c0_157], %267 {strides = array<i32>} : memref<2x8x64xf32, #tpu.memory_space<vmem>>, vector<1x8x64xf32>,
    %c1_158 = arith.constant 1 : index
    %c0_159 = arith.constant 0 : index
    %c0_160 = arith.constant 0 : index
    %268 = vector.load %arg1[%c1_158, %c0_159, %c0_160] : memref<2x8x128xbf16, #tpu.memory_space<vmem>>, vector<1x8x128xbf16>
    %269 = vector.shape_cast %268 : vector<1x8x128xbf16> to vector<8x128xbf16>
    %270 = vector.extract_strided_slice %269 {offsets = [0, 0], sizes = [8, 32], strides = [1, 1]} : vector<8x128xbf16> to vector<8x32xbf16>
    %271 = vector.extract_strided_slice %269 {offsets = [0, 32], sizes = [8, 32], strides = [1, 1]} : vector<8x128xbf16> to vector<8x32xbf16>
    %272 = arith.maximumf %270, %271 : vector<8x32xbf16>
    %273 = vector.extract_strided_slice %269 {offsets = [0, 64], sizes = [8, 32], strides = [1, 1]} : vector<8x128xbf16> to vector<8x32xbf16>
    %274 = vector.extract_strided_slice %269 {offsets = [0, 96], sizes = [8, 32], strides = [1, 1]} : vector<8x128xbf16> to vector<8x32xbf16>
    %275 = arith.maximumf %273, %274 : vector<8x32xbf16>
    %276 = arith.maximumf %272, %275 : vector<8x32xbf16>
    %277 = arith.extf %276 : vector<8x32xbf16> to vector<8x32xf32>
    %c1_161 = arith.constant 1 : index
    %c0_162 = arith.constant 0 : index
    %278 = vector.load %arg6[%c1_161, %c0_162] : memref<10x32xbf16, #tpu.memory_space<vmem>>, vector<8x32xbf16>
    tpu.vector_store %arg6[%c1_161, %c0_162], %276 {strides = array<i32>} : memref<10x32xbf16, #tpu.memory_space<vmem>>, vector<8x32xbf16>,
    %c0_163 = arith.constant 0 : index
    %c0_164 = arith.constant 0 : index
    %279 = vector.load %arg6[%c0_163, %c0_164] : memref<10x32xbf16, #tpu.memory_space<vmem>>, vector<8x32xbf16>
    %c0_165 = arith.constant 0 : index
    %c0_166 = arith.constant 0 : index
    %c0_167 = arith.constant 0 : index
    %c0_168 = arith.constant 0 : index
    %280 = vector.load %arg2[%c0_165, %c0_166, %c0_167, %c0_168] : memref<4x3x64x64xbf16, #tpu.memory_space<vmem>>, vector<1x1x32x32xbf16>
    %281 = vector.shape_cast %280 : vector<1x1x32x32xbf16> to vector<32x32xbf16>
    %cst_169 = arith.constant dense<0.000000e+00> : vector<8x32xf32>
    %282 = tpu.matmul %279, %281, %cst_169 {dimension_numbers = #tpu.dot_dimension_numbers<[1], [0], [0], [1], [0, 0, 1, 1], [], []>} : vector<8x32xbf16>, vector<32x32xbf16>, vector<8x32xf32> -> vector<8x32xf32>
    %c1_170 = arith.constant 1 : index
    %c0_171 = arith.constant 0 : index
    %283 = vector.load %arg6[%c1_170, %c0_171] : memref<10x32xbf16, #tpu.memory_space<vmem>>, vector<8x32xbf16>
    %c0_172 = arith.constant 0 : index
    %c1_173 = arith.constant 1 : index
    %c0_174 = arith.constant 0 : index
    %c0_175 = arith.constant 0 : index
    %284 = vector.load %arg2[%c0_172, %c1_173, %c0_174, %c0_175] : memref<4x3x64x64xbf16, #tpu.memory_space<vmem>>, vector<1x1x32x32xbf16>
    %285 = vector.shape_cast %284 : vector<1x1x32x32xbf16> to vector<32x32xbf16>
    %cst_176 = arith.constant dense<0.000000e+00> : vector<8x32xf32>
    %286 = tpu.matmul %283, %285, %cst_176 {dimension_numbers = #tpu.dot_dimension_numbers<[1], [0], [0], [1], [0, 0, 1, 1], [], []>} : vector<8x32xbf16>, vector<32x32xbf16>, vector<8x32xf32> -> vector<8x32xf32>
    %287 = arith.addf %282, %286 : vector<8x32xf32>
    %c2_177 = arith.constant 2 : index
    %c0_178 = arith.constant 0 : index
    %288 = vector.load %arg6[%c2_177, %c0_178] : memref<10x32xbf16, #tpu.memory_space<vmem>>, vector<8x32xbf16>
    %c0_179 = arith.constant 0 : index
    %c2_180 = arith.constant 2 : index
    %c0_181 = arith.constant 0 : index
    %c0_182 = arith.constant 0 : index
    %289 = vector.load %arg2[%c0_179, %c2_180, %c0_181, %c0_182] : memref<4x3x64x64xbf16, #tpu.memory_space<vmem>>, vector<1x1x32x32xbf16>
    %290 = vector.shape_cast %289 : vector<1x1x32x32xbf16> to vector<32x32xbf16>
    %cst_183 = arith.constant dense<0.000000e+00> : vector<8x32xf32>
    %291 = tpu.matmul %288, %290, %cst_183 {dimension_numbers = #tpu.dot_dimension_numbers<[1], [0], [0], [1], [0, 0, 1, 1], [], []>} : vector<8x32xbf16>, vector<32x32xbf16>, vector<8x32xf32> -> vector<8x32xf32>
    %292 = arith.addf %287, %291 : vector<8x32xf32>
    %293 = vector.shape_cast %292 : vector<8x32xf32> to vector<1x8x32xf32>
    %cst_184 = arith.constant dense<0.000000e+00> : vector<1xf32>
    %294 = vector.multi_reduction <add>, %293, %cst_184 [1, 2] : vector<1x8x32xf32> to vector<1xf32>
    %295 = vector.shape_cast %294 : vector<1xf32> to vector<1x1x1xf32>
    %296 = vector.extract %295[0, 0, 0] : f32 from vector<1x1x1xf32>
    %297 = vector.broadcast %296 : f32 to vector<1x1xf32>
    %298 = arith.mulf %292, %292 : vector<8x32xf32>
    %299 = vector.shape_cast %298 : vector<8x32xf32> to vector<1x8x32xf32>
    %cst_185 = arith.constant dense<0.000000e+00> : vector<1xf32>
    %300 = vector.multi_reduction <add>, %299, %cst_185 [1, 2] : vector<1x8x32xf32> to vector<1xf32>
    %301 = vector.shape_cast %300 : vector<1xf32> to vector<1x1x1xf32>
    %302 = vector.extract %301[0, 0, 0] : f32 from vector<1x1x1xf32>
    %303 = vector.broadcast %302 : f32 to vector<1x1xf32>
    %cst_186 = arith.constant 3.906250e-03 : f32
    %304 = vector.broadcast %cst_186 : f32 to vector<1x1xf32>
    %305 = arith.mulf %297, %304 : vector<1x1xf32>
    %cst_187 = arith.constant 3.906250e-03 : f32
    %306 = vector.broadcast %cst_187 : f32 to vector<1x1xf32>
    %307 = arith.mulf %303, %306 : vector<1x1xf32>
    %308 = arith.mulf %305, %305 : vector<1x1xf32>
    %309 = arith.subf %307, %308 : vector<1x1xf32>
    %cst_188 = arith.constant 0.000000e+00 : f32
    %310 = vector.broadcast %cst_188 : f32 to vector<1x1xf32>
    %311 = arith.maximumf %309, %310 : vector<1x1xf32>
    %312 = vector.broadcast %305 : vector<1x1xf32> to vector<8x32xf32>
    %313 = arith.subf %292, %312 : vector<8x32xf32>
    %cst_189 = arith.constant 9.99999974E-6 : f32
    %314 = vector.broadcast %cst_189 : f32 to vector<1x1xf32>
    %315 = arith.addf %311, %314 : vector<1x1xf32>
    %316 = math.rsqrt %315 : vector<1x1xf32>
    %317 = vector.broadcast %316 : vector<1x1xf32> to vector<8x32xf32>
    %318 = arith.mulf %313, %317 : vector<8x32xf32>
    %319 = vector.broadcast %8 : vector<1x32xf32> to vector<8x32xf32>
    %320 = arith.mulf %318, %319 : vector<8x32xf32>
    %321 = vector.broadcast %9 : vector<1x32xf32> to vector<8x32xf32>
    %322 = arith.addf %320, %321 : vector<8x32xf32>
    %323 = arith.mulf %322, %322 : vector<8x32xf32>
    %324 = arith.mulf %322, %323 : vector<8x32xf32>
    %cst_190 = arith.constant 4.471500e-02 : f32
    %325 = vector.broadcast %cst_190 : f32 to vector<8x32xf32>
    %326 = arith.mulf %325, %324 : vector<8x32xf32>
    %327 = arith.addf %322, %326 : vector<8x32xf32>
    %cst_191 = arith.constant 0.797884583 : f32
    %328 = vector.broadcast %cst_191 : f32 to vector<8x32xf32>
    %329 = arith.mulf %328, %327 : vector<8x32xf32>
    %330 = math.tanh %329 : vector<8x32xf32>
    %cst_192 = arith.constant 1.000000e+00 : f32
    %331 = vector.broadcast %cst_192 : f32 to vector<8x32xf32>
    %332 = arith.addf %331, %330 : vector<8x32xf32>
    %cst_193 = arith.constant 5.000000e-01 : f32
    %333 = vector.broadcast %cst_193 : f32 to vector<8x32xf32>
    %334 = arith.mulf %333, %332 : vector<8x32xf32>
    %335 = arith.mulf %322, %334 : vector<8x32xf32>
    %336 = arith.truncf %335 : vector<8x32xf32> to vector<8x32xbf16>
    %c1_194 = arith.constant 1 : index
    %c0_195 = arith.constant 0 : index
    %337 = vector.load %arg6[%c1_194, %c0_195] : memref<10x32xbf16, #tpu.memory_space<vmem>>, vector<8x32xbf16>
    tpu.vector_store %arg6[%c1_194, %c0_195], %336 {strides = array<i32>} : memref<10x32xbf16, #tpu.memory_space<vmem>>, vector<8x32xbf16>,
    %c0_196 = arith.constant 0 : index
    %c0_197 = arith.constant 0 : index
    %338 = vector.load %arg6[%c0_196, %c0_197] : memref<10x32xbf16, #tpu.memory_space<vmem>>, vector<8x32xbf16>
    %c1_198 = arith.constant 1 : index
    %c0_199 = arith.constant 0 : index
    %c0_200 = arith.constant 0 : index
    %c0_201 = arith.constant 0 : index
    %339 = vector.load %arg2[%c1_198, %c0_199, %c0_200, %c0_201] : memref<4x3x64x64xbf16, #tpu.memory_space<vmem>>, vector<1x1x32x32xbf16>
    %340 = vector.shape_cast %339 : vector<1x1x32x32xbf16> to vector<32x32xbf16>
    %cst_202 = arith.constant dense<0.000000e+00> : vector<8x32xf32>
    %341 = tpu.matmul %338, %340, %cst_202 {dimension_numbers = #tpu.dot_dimension_numbers<[1], [0], [0], [1], [0, 0, 1, 1], [], []>} : vector<8x32xbf16>, vector<32x32xbf16>, vector<8x32xf32> -> vector<8x32xf32>
    %c1_203 = arith.constant 1 : index
    %c0_204 = arith.constant 0 : index
    %342 = vector.load %arg6[%c1_203, %c0_204] : memref<10x32xbf16, #tpu.memory_space<vmem>>, vector<8x32xbf16>
    %c1_205 = arith.constant 1 : index
    %c1_206 = arith.constant 1 : index
    %c0_207 = arith.constant 0 : index
    %c0_208 = arith.constant 0 : index
    %343 = vector.load %arg2[%c1_205, %c1_206, %c0_207, %c0_208] : memref<4x3x64x64xbf16, #tpu.memory_space<vmem>>, vector<1x1x32x32xbf16>
    %344 = vector.shape_cast %343 : vector<1x1x32x32xbf16> to vector<32x32xbf16>
    %cst_209 = arith.constant dense<0.000000e+00> : vector<8x32xf32>
    %345 = tpu.matmul %342, %344, %cst_209 {dimension_numbers = #tpu.dot_dimension_numbers<[1], [0], [0], [1], [0, 0, 1, 1], [], []>} : vector<8x32xbf16>, vector<32x32xbf16>, vector<8x32xf32> -> vector<8x32xf32>
    %346 = arith.addf %341, %345 : vector<8x32xf32>
    %c2_210 = arith.constant 2 : index
    %c0_211 = arith.constant 0 : index
    %347 = vector.load %arg6[%c2_210, %c0_211] : memref<10x32xbf16, #tpu.memory_space<vmem>>, vector<8x32xbf16>
    %c1_212 = arith.constant 1 : index
    %c2_213 = arith.constant 2 : index
    %c0_214 = arith.constant 0 : index
    %c0_215 = arith.constant 0 : index
    %348 = vector.load %arg2[%c1_212, %c2_213, %c0_214, %c0_215] : memref<4x3x64x64xbf16, #tpu.memory_space<vmem>>, vector<1x1x32x32xbf16>
    %349 = vector.shape_cast %348 : vector<1x1x32x32xbf16> to vector<32x32xbf16>
    %cst_216 = arith.constant dense<0.000000e+00> : vector<8x32xf32>
    %350 = tpu.matmul %347, %349, %cst_216 {dimension_numbers = #tpu.dot_dimension_numbers<[1], [0], [0], [1], [0, 0, 1, 1], [], []>} : vector<8x32xbf16>, vector<32x32xbf16>, vector<8x32xf32> -> vector<8x32xf32>
    %351 = arith.addf %346, %350 : vector<8x32xf32>
    %352 = vector.shape_cast %351 : vector<8x32xf32> to vector<1x8x32xf32>
    %cst_217 = arith.constant dense<0.000000e+00> : vector<1xf32>
    %353 = vector.multi_reduction <add>, %352, %cst_217 [1, 2] : vector<1x8x32xf32> to vector<1xf32>
    %354 = vector.shape_cast %353 : vector<1xf32> to vector<1x1x1xf32>
    %355 = vector.extract %354[0, 0, 0] : f32 from vector<1x1x1xf32>
    %356 = vector.broadcast %355 : f32 to vector<1x1xf32>
    %357 = arith.mulf %351, %351 : vector<8x32xf32>
    %358 = vector.shape_cast %357 : vector<8x32xf32> to vector<1x8x32xf32>
    %cst_218 = arith.constant dense<0.000000e+00> : vector<1xf32>
    %359 = vector.multi_reduction <add>, %358, %cst_218 [1, 2] : vector<1x8x32xf32> to vector<1xf32>
    %360 = vector.shape_cast %359 : vector<1xf32> to vector<1x1x1xf32>
    %361 = vector.extract %360[0, 0, 0] : f32 from vector<1x1x1xf32>
    %362 = vector.broadcast %361 : f32 to vector<1x1xf32>
    %cst_219 = arith.constant 3.906250e-03 : f32
    %363 = vector.broadcast %cst_219 : f32 to vector<1x1xf32>
    %364 = arith.mulf %356, %363 : vector<1x1xf32>
    %cst_220 = arith.constant 3.906250e-03 : f32
    %365 = vector.broadcast %cst_220 : f32 to vector<1x1xf32>
    %366 = arith.mulf %362, %365 : vector<1x1xf32>
    %367 = arith.mulf %364, %364 : vector<1x1xf32>
    %368 = arith.subf %366, %367 : vector<1x1xf32>
    %cst_221 = arith.constant 0.000000e+00 : f32
    %369 = vector.broadcast %cst_221 : f32 to vector<1x1xf32>
    %370 = arith.maximumf %368, %369 : vector<1x1xf32>
    %371 = vector.broadcast %364 : vector<1x1xf32> to vector<8x32xf32>
    %372 = arith.subf %351, %371 : vector<8x32xf32>
    %cst_222 = arith.constant 9.99999974E-6 : f32
    %373 = vector.broadcast %cst_222 : f32 to vector<1x1xf32>
    %374 = arith.addf %370, %373 : vector<1x1xf32>
    %375 = math.rsqrt %374 : vector<1x1xf32>
    %376 = vector.broadcast %375 : vector<1x1xf32> to vector<8x32xf32>
    %377 = arith.mulf %372, %376 : vector<8x32xf32>
    %378 = vector.broadcast %10 : vector<1x32xf32> to vector<8x32xf32>
    %379 = arith.mulf %377, %378 : vector<8x32xf32>
    %380 = vector.broadcast %11 : vector<1x32xf32> to vector<8x32xf32>
    %381 = arith.addf %379, %380 : vector<8x32xf32>
    %382 = arith.addf %277, %381 : vector<8x32xf32>
    %383 = arith.mulf %382, %382 : vector<8x32xf32>
    %384 = arith.mulf %382, %383 : vector<8x32xf32>
    %cst_223 = arith.constant 4.471500e-02 : f32
    %385 = vector.broadcast %cst_223 : f32 to vector<8x32xf32>
    %386 = arith.mulf %385, %384 : vector<8x32xf32>
    %387 = arith.addf %382, %386 : vector<8x32xf32>
    %cst_224 = arith.constant 0.797884583 : f32
    %388 = vector.broadcast %cst_224 : f32 to vector<8x32xf32>
    %389 = arith.mulf %388, %387 : vector<8x32xf32>
    %390 = math.tanh %389 : vector<8x32xf32>
    %cst_225 = arith.constant 1.000000e+00 : f32
    %391 = vector.broadcast %cst_225 : f32 to vector<8x32xf32>
    %392 = arith.addf %391, %390 : vector<8x32xf32>
    %cst_226 = arith.constant 5.000000e-01 : f32
    %393 = vector.broadcast %cst_226 : f32 to vector<8x32xf32>
    %394 = arith.mulf %393, %392 : vector<8x32xf32>
    %395 = arith.mulf %382, %394 : vector<8x32xf32>
    %396 = arith.truncf %395 : vector<8x32xf32> to vector<8x32xbf16>
    %c1_227 = arith.constant 1 : index
    %c0_228 = arith.constant 0 : index
    %397 = vector.load %arg6[%c1_227, %c0_228] : memref<10x32xbf16, #tpu.memory_space<vmem>>, vector<8x32xbf16>
    tpu.vector_store %arg6[%c1_227, %c0_228], %396 {strides = array<i32>} : memref<10x32xbf16, #tpu.memory_space<vmem>>, vector<8x32xbf16>,
    %c0_229 = arith.constant 0 : index
    %c0_230 = arith.constant 0 : index
    %398 = vector.load %arg6[%c0_229, %c0_230] : memref<10x32xbf16, #tpu.memory_space<vmem>>, vector<8x32xbf16>
    %c2_231 = arith.constant 2 : index
    %c0_232 = arith.constant 0 : index
    %c0_233 = arith.constant 0 : index
    %c0_234 = arith.constant 0 : index
    %399 = vector.load %arg2[%c2_231, %c0_232, %c0_233, %c0_234] : memref<4x3x64x64xbf16, #tpu.memory_space<vmem>>, vector<1x1x32x64xbf16>
    %400 = vector.shape_cast %399 : vector<1x1x32x64xbf16> to vector<32x64xbf16>
    %cst_235 = arith.constant dense<0.000000e+00> : vector<8x64xf32>
    %401 = tpu.matmul %398, %400, %cst_235 {dimension_numbers = #tpu.dot_dimension_numbers<[1], [0], [0], [1], [0, 0, 1, 1], [], []>} : vector<8x32xbf16>, vector<32x64xbf16>, vector<8x64xf32> -> vector<8x64xf32>
    %c1_236 = arith.constant 1 : index
    %c0_237 = arith.constant 0 : index
    %402 = vector.load %arg6[%c1_236, %c0_237] : memref<10x32xbf16, #tpu.memory_space<vmem>>, vector<8x32xbf16>
    %c2_238 = arith.constant 2 : index
    %c1_239 = arith.constant 1 : index
    %c0_240 = arith.constant 0 : index
    %c0_241 = arith.constant 0 : index
    %403 = vector.load %arg2[%c2_238, %c1_239, %c0_240, %c0_241] : memref<4x3x64x64xbf16, #tpu.memory_space<vmem>>, vector<1x1x32x64xbf16>
    %404 = vector.shape_cast %403 : vector<1x1x32x64xbf16> to vector<32x64xbf16>
    %cst_242 = arith.constant dense<0.000000e+00> : vector<8x64xf32>
    %405 = tpu.matmul %402, %404, %cst_242 {dimension_numbers = #tpu.dot_dimension_numbers<[1], [0], [0], [1], [0, 0, 1, 1], [], []>} : vector<8x32xbf16>, vector<32x64xbf16>, vector<8x64xf32> -> vector<8x64xf32>
    %406 = arith.addf %401, %405 : vector<8x64xf32>
    %c2_243 = arith.constant 2 : index
    %c0_244 = arith.constant 0 : index
    %407 = vector.load %arg6[%c2_243, %c0_244] : memref<10x32xbf16, #tpu.memory_space<vmem>>, vector<8x32xbf16>
    %c2_245 = arith.constant 2 : index
    %c2_246 = arith.constant 2 : index
    %c0_247 = arith.constant 0 : index
    %c0_248 = arith.constant 0 : index
    %408 = vector.load %arg2[%c2_245, %c2_246, %c0_247, %c0_248] : memref<4x3x64x64xbf16, #tpu.memory_space<vmem>>, vector<1x1x32x64xbf16>
    %409 = vector.shape_cast %408 : vector<1x1x32x64xbf16> to vector<32x64xbf16>
    %cst_249 = arith.constant dense<0.000000e+00> : vector<8x64xf32>
    %410 = tpu.matmul %407, %409, %cst_249 {dimension_numbers = #tpu.dot_dimension_numbers<[1], [0], [0], [1], [0, 0, 1, 1], [], []>} : vector<8x32xbf16>, vector<32x64xbf16>, vector<8x64xf32> -> vector<8x64xf32>
    %411 = arith.addf %406, %410 : vector<8x64xf32>
    %412 = vector.shape_cast %411 : vector<8x64xf32> to vector<1x8x64xf32>
    %cst_250 = arith.constant dense<0.000000e+00> : vector<1xf32>
    %413 = vector.multi_reduction <add>, %412, %cst_250 [1, 2] : vector<1x8x64xf32> to vector<1xf32>
    %414 = vector.shape_cast %413 : vector<1xf32> to vector<1x1x1xf32>
    %415 = vector.extract %414[0, 0, 0] : f32 from vector<1x1x1xf32>
    %416 = vector.broadcast %415 : f32 to vector<1x1xf32>
    %417 = arith.mulf %411, %411 : vector<8x64xf32>
    %418 = vector.shape_cast %417 : vector<8x64xf32> to vector<1x8x64xf32>
    %cst_251 = arith.constant dense<0.000000e+00> : vector<1xf32>
    %419 = vector.multi_reduction <add>, %418, %cst_251 [1, 2] : vector<1x8x64xf32> to vector<1xf32>
    %420 = vector.shape_cast %419 : vector<1xf32> to vector<1x1x1xf32>
    %421 = vector.extract %420[0, 0, 0] : f32 from vector<1x1x1xf32>
    %422 = vector.broadcast %421 : f32 to vector<1x1xf32>
    %cst_252 = arith.constant 0.001953125 : f32
    %423 = vector.broadcast %cst_252 : f32 to vector<1x1xf32>
    %424 = arith.mulf %416, %423 : vector<1x1xf32>
    %cst_253 = arith.constant 0.001953125 : f32
    %425 = vector.broadcast %cst_253 : f32 to vector<1x1xf32>
    %426 = arith.mulf %422, %425 : vector<1x1xf32>
    %427 = arith.mulf %424, %424 : vector<1x1xf32>
    %428 = arith.subf %426, %427 : vector<1x1xf32>
    %cst_254 = arith.constant 0.000000e+00 : f32
    %429 = vector.broadcast %cst_254 : f32 to vector<1x1xf32>
    %430 = arith.maximumf %428, %429 : vector<1x1xf32>
    %431 = vector.broadcast %424 : vector<1x1xf32> to vector<8x64xf32>
    %432 = arith.subf %411, %431 : vector<8x64xf32>
    %cst_255 = arith.constant 9.99999974E-6 : f32
    %433 = vector.broadcast %cst_255 : f32 to vector<1x1xf32>
    %434 = arith.addf %430, %433 : vector<1x1xf32>
    %435 = math.rsqrt %434 : vector<1x1xf32>
    %436 = vector.broadcast %435 : vector<1x1xf32> to vector<8x64xf32>
    %437 = arith.mulf %432, %436 : vector<8x64xf32>
    %438 = vector.broadcast %12 : vector<1x64xf32> to vector<8x64xf32>
    %439 = arith.mulf %437, %438 : vector<8x64xf32>
    %440 = vector.broadcast %13 : vector<1x64xf32> to vector<8x64xf32>
    %441 = arith.addf %439, %440 : vector<8x64xf32>
    %442 = arith.mulf %441, %441 : vector<8x64xf32>
    %443 = arith.mulf %441, %442 : vector<8x64xf32>
    %cst_256 = arith.constant 4.471500e-02 : f32
    %444 = vector.broadcast %cst_256 : f32 to vector<8x64xf32>
    %445 = arith.mulf %444, %443 : vector<8x64xf32>
    %446 = arith.addf %441, %445 : vector<8x64xf32>
    %cst_257 = arith.constant 0.797884583 : f32
    %447 = vector.broadcast %cst_257 : f32 to vector<8x64xf32>
    %448 = arith.mulf %447, %446 : vector<8x64xf32>
    %449 = math.tanh %448 : vector<8x64xf32>
    %cst_258 = arith.constant 1.000000e+00 : f32
    %450 = vector.broadcast %cst_258 : f32 to vector<8x64xf32>
    %451 = arith.addf %450, %449 : vector<8x64xf32>
    %cst_259 = arith.constant 5.000000e-01 : f32
    %452 = vector.broadcast %cst_259 : f32 to vector<8x64xf32>
    %453 = arith.mulf %452, %451 : vector<8x64xf32>
    %454 = arith.mulf %441, %453 : vector<8x64xf32>
    %455 = arith.truncf %454 : vector<8x64xf32> to vector<8x64xbf16>
    %c1_260 = arith.constant 1 : index
    %c0_261 = arith.constant 0 : index
    %456 = vector.load %arg7[%c1_260, %c0_261] : memref<10x64xbf16, #tpu.memory_space<vmem>>, vector<8x64xbf16>
    tpu.vector_store %arg7[%c1_260, %c0_261], %455 {strides = array<i32>} : memref<10x64xbf16, #tpu.memory_space<vmem>>, vector<8x64xbf16>,
    %c0_262 = arith.constant 0 : index
    %c0_263 = arith.constant 0 : index
    %457 = vector.load %arg7[%c0_262, %c0_263] : memref<10x64xbf16, #tpu.memory_space<vmem>>, vector<8x64xbf16>
    %c3_264 = arith.constant 3 : index
    %c0_265 = arith.constant 0 : index
    %c0_266 = arith.constant 0 : index
    %c0_267 = arith.constant 0 : index
    %458 = vector.load %arg2[%c3_264, %c0_265, %c0_266, %c0_267] : memref<4x3x64x64xbf16, #tpu.memory_space<vmem>>, vector<1x1x64x64xbf16>
    %459 = vector.shape_cast %458 : vector<1x1x64x64xbf16> to vector<64x64xbf16>
    %cst_268 = arith.constant dense<0.000000e+00> : vector<8x64xf32>
    %460 = tpu.matmul %457, %459, %cst_268 {dimension_numbers = #tpu.dot_dimension_numbers<[1], [0], [0], [1], [0, 0, 1, 1], [], []>} : vector<8x64xbf16>, vector<64x64xbf16>, vector<8x64xf32> -> vector<8x64xf32>
    %c1_269 = arith.constant 1 : index
    %c0_270 = arith.constant 0 : index
    %461 = vector.load %arg7[%c1_269, %c0_270] : memref<10x64xbf16, #tpu.memory_space<vmem>>, vector<8x64xbf16>
    %c3_271 = arith.constant 3 : index
    %c1_272 = arith.constant 1 : index
    %c0_273 = arith.constant 0 : index
    %c0_274 = arith.constant 0 : index
    %462 = vector.load %arg2[%c3_271, %c1_272, %c0_273, %c0_274] : memref<4x3x64x64xbf16, #tpu.memory_space<vmem>>, vector<1x1x64x64xbf16>
    %463 = vector.shape_cast %462 : vector<1x1x64x64xbf16> to vector<64x64xbf16>
    %cst_275 = arith.constant dense<0.000000e+00> : vector<8x64xf32>
    %464 = tpu.matmul %461, %463, %cst_275 {dimension_numbers = #tpu.dot_dimension_numbers<[1], [0], [0], [1], [0, 0, 1, 1], [], []>} : vector<8x64xbf16>, vector<64x64xbf16>, vector<8x64xf32> -> vector<8x64xf32>
    %465 = arith.addf %460, %464 : vector<8x64xf32>
    %c2_276 = arith.constant 2 : index
    %c0_277 = arith.constant 0 : index
    %466 = vector.load %arg7[%c2_276, %c0_277] : memref<10x64xbf16, #tpu.memory_space<vmem>>, vector<8x64xbf16>
    %c3_278 = arith.constant 3 : index
    %c2_279 = arith.constant 2 : index
    %c0_280 = arith.constant 0 : index
    %c0_281 = arith.constant 0 : index
    %467 = vector.load %arg2[%c3_278, %c2_279, %c0_280, %c0_281] : memref<4x3x64x64xbf16, #tpu.memory_space<vmem>>, vector<1x1x64x64xbf16>
    %468 = vector.shape_cast %467 : vector<1x1x64x64xbf16> to vector<64x64xbf16>
    %cst_282 = arith.constant dense<0.000000e+00> : vector<8x64xf32>
    %469 = tpu.matmul %466, %468, %cst_282 {dimension_numbers = #tpu.dot_dimension_numbers<[1], [0], [0], [1], [0, 0, 1, 1], [], []>} : vector<8x64xbf16>, vector<64x64xbf16>, vector<8x64xf32> -> vector<8x64xf32>
    %470 = arith.addf %465, %469 : vector<8x64xf32>
    %471 = vector.shape_cast %470 : vector<8x64xf32> to vector<1x8x64xf32>
    %cst_283 = arith.constant dense<0.000000e+00> : vector<1xf32>
    %472 = vector.multi_reduction <add>, %471, %cst_283 [1, 2] : vector<1x8x64xf32> to vector<1xf32>
    %473 = vector.shape_cast %472 : vector<1xf32> to vector<1x1x1xf32>
    %474 = vector.extract %473[0, 0, 0] : f32 from vector<1x1x1xf32>
    %475 = vector.broadcast %474 : f32 to vector<1x1xf32>
    %476 = arith.mulf %470, %470 : vector<8x64xf32>
    %477 = vector.shape_cast %476 : vector<8x64xf32> to vector<1x8x64xf32>
    %cst_284 = arith.constant dense<0.000000e+00> : vector<1xf32>
    %478 = vector.multi_reduction <add>, %477, %cst_284 [1, 2] : vector<1x8x64xf32> to vector<1xf32>
    %479 = vector.shape_cast %478 : vector<1xf32> to vector<1x1x1xf32>
    %480 = vector.extract %479[0, 0, 0] : f32 from vector<1x1x1xf32>
    %481 = vector.broadcast %480 : f32 to vector<1x1xf32>
    %cst_285 = arith.constant 0.001953125 : f32
    %482 = vector.broadcast %cst_285 : f32 to vector<1x1xf32>
    %483 = arith.mulf %475, %482 : vector<1x1xf32>
    %cst_286 = arith.constant 0.001953125 : f32
    %484 = vector.broadcast %cst_286 : f32 to vector<1x1xf32>
    %485 = arith.mulf %481, %484 : vector<1x1xf32>
    %486 = arith.mulf %483, %483 : vector<1x1xf32>
    %487 = arith.subf %485, %486 : vector<1x1xf32>
    %cst_287 = arith.constant 0.000000e+00 : f32
    %488 = vector.broadcast %cst_287 : f32 to vector<1x1xf32>
    %489 = arith.maximumf %487, %488 : vector<1x1xf32>
    %490 = vector.broadcast %483 : vector<1x1xf32> to vector<8x64xf32>
    %491 = arith.subf %470, %490 : vector<8x64xf32>
    %cst_288 = arith.constant 9.99999974E-6 : f32
    %492 = vector.broadcast %cst_288 : f32 to vector<1x1xf32>
    %493 = arith.addf %489, %492 : vector<1x1xf32>
    %494 = math.rsqrt %493 : vector<1x1xf32>
    %495 = vector.broadcast %494 : vector<1x1xf32> to vector<8x64xf32>
    %496 = arith.mulf %491, %495 : vector<8x64xf32>
    %497 = vector.broadcast %14 : vector<1x64xf32> to vector<8x64xf32>
    %498 = arith.mulf %496, %497 : vector<8x64xf32>
    %499 = vector.broadcast %15 : vector<1x64xf32> to vector<8x64xf32>
    %500 = arith.addf %498, %499 : vector<8x64xf32>
    %c2_i32_289 = arith.constant 2 : i32
    %501 = arith.muli %arg0, %c2_i32_289 : i32
    %c1_i32 = arith.constant 1 : i32
    %502 = arith.addi %501, %c1_i32 : i32
    %503 = arith.index_cast %502 : i32 to index
    %c0_290 = arith.constant 0 : index
    %504 = vector.load %arg4[%503, %c0_290] : memref<2x8xf32, #tpu.memory_space<vmem>>, vector<1x8xf32>
    %505 = arith.negf %504 : vector<1x8xf32>
    %506 = math.exp %505 : vector<1x8xf32>
    %cst_291 = arith.constant 1.000000e+00 : f32
    %507 = vector.broadcast %cst_291 : f32 to vector<1x8xf32>
    %508 = arith.addf %507, %506 : vector<1x8xf32>
    %509 = arith.divf %507, %508 : vector<1x8xf32>
    %510 = arith.mulf %504, %509 : vector<1x8xf32>
    %cst_292 = arith.constant dense<0.000000e+00> : vector<1x64xf32>
    %511 = tpu.matmul %510, %17, %cst_292 {dimension_numbers = #tpu.dot_dimension_numbers<[1], [0], [0], [1], [0, 0, 1, 1], [], []>} : vector<1x8xf32>, vector<8x64xf32>, vector<1x64xf32> -> vector<1x64xf32>
    %512 = arith.addf %511, %16 : vector<1x64xf32>
    %513 = vector.broadcast %512 : vector<1x64xf32> to vector<8x64xf32>
    %514 = arith.addf %500, %513 : vector<8x64xf32>
    %c1_293 = arith.constant 1 : index
    %c0_294 = arith.constant 0 : index
    %c0_295 = arith.constant 0 : index
    %515 = vector.load %arg5[%c1_293, %c0_294, %c0_295] : memref<2x8x64xf32, #tpu.memory_space<vmem>>, vector<1x8x64xf32>
    %516 = vector.shape_cast %515 : vector<1x8x64xf32> to vector<8x64xf32>
    %517 = vector.shape_cast %514 : vector<8x64xf32> to vector<1x8x64xf32>
    tpu.vector_store %arg5[%c1_293, %c0_294, %c0_295], %517 {strides = array<i32>} : memref<2x8x64xf32, #tpu.memory_space<vmem>>, vector<1x8x64xf32>,
    return
  }
  func.func @transform_0(%arg0: i32) -> (i32, i32, i32) {
    %c0_i32 = arith.constant 0 : i32
    %c0_i32_0 = arith.constant 0 : i32
    %c0_i32_1 = arith.constant 0 : i32
    return %arg0, %c0_i32, %c0_i32_0 : i32, i32, i32
  }
  func.func @transform_1(%arg0: i32) -> (i32, i32, i32, i32) {
    %c0_i32 = arith.constant 0 : i32
    %c0_i32_0 = arith.constant 0 : i32
    %c0_i32_1 = arith.constant 0 : i32
    %c0_i32_2 = arith.constant 0 : i32
    %c0_i32_3 = arith.constant 0 : i32
    return %c0_i32, %c0_i32_0, %c0_i32_1, %c0_i32_2 : i32, i32, i32, i32
  }
  func.func @transform_2(%arg0: i32) -> (i32, i32) {
    %c0_i32 = arith.constant 0 : i32
    %c0_i32_0 = arith.constant 0 : i32
    %c0_i32_1 = arith.constant 0 : i32
    return %c0_i32, %c0_i32_0 : i32, i32
  }
  func.func @transform_3(%arg0: i32) -> (i32, i32) {
    %c0_i32 = arith.constant 0 : i32
    %c0_i32_0 = arith.constant 0 : i32
    %c0_i32_1 = arith.constant 0 : i32
    return %c0_i32, %c0_i32_0 : i32, i32
  }
  func.func @transform_4(%arg0: i32) -> (i32, i32, i32) {
    %c0_i32 = arith.constant 0 : i32
    %c0_i32_0 = arith.constant 0 : i32
    %c0_i32_1 = arith.constant 0 : i32
    return %arg0, %c0_i32, %c0_i32_0 : i32, i32, i32
  }
}

</mosaic_0001>

<bundles_post_ra>
// kernel: tpu_custom_call.1
= control target key start
LH: loop header
LB: loop body
LE: loop exit
PB: predicated region body
PF: predicated region fallthrough
CT: control target
= control target key end

     0   :  { %9 = vsyncpa [#allocation5], 0  ;;  %s3577_s0 = inlined_call_operand.hbm [shape: bf16[2,8,128], index: 0, kind: input, shape index: {}]   ;;  %s3578_s1 = inlined_call_operand.hbm [shape: bf16[4,3,64,64], index: 1, kind: input, shape index: {}]   ;;  %s3579_s2 = inlined_call_operand.hbm [shape: f32[17,64], index: 2, kind: input, shape index: {}]   ;;  %s3580_s3 = inlined_call_operand.vmem [shape: f32[2,8], index: 3, kind: input, shape index: {}]   ;;  %s3581_s4 = inlined_call_operand.hbm [shape: f32[2,8,64], index: 4, kind: output, shape index: {}]  }
   0x1   :  { %10 = vsyncpa [#allocation8], 0 }
   0x2   :  { %11 = vsyncpa [#allocation6], 0  ;;  %s3191_s15 = smov [#allocation7]   ;;  %s3192_s17 = smov [#allocation4]  }
   0x3   :  { %s29_s16 = sshll.u32 %s3191_s15, 4  ;;  %s17_s18 = sshll.u32 %s3192_s17, 4  ;;  %s30_s16 = int_to_ptr.vmem [resolvable:$true] %s29_s16  ;;  %s18_s18 = int_to_ptr.vmem [resolvable:$true] %s17_s18 }
   0x4   :  { %s3113_s19 = scalar_lea.vmem %s30_s16, 6144  ;;  %p3118_p1 = scmp.lt.s32.totalorder %s30_s16, %s30_s16 }
   0x5   :  { %p3114_p0 = scmp.ne.s32.totalorder %s30_s16, %s3113_s19  ;;  %p3119_p2 = scmp.lt.s32.totalorder %s3113_s19, %s3113_s19 }
   0x7   :  { %p3120_p3 = por %p3119_p2, %p3118_p1 }
   0x9   :  { %p3121_p4 = pnand %p3120_p3, %p3114_p0 }
   0xb   :  { %3124 = shalt.err (!%p3121_p4)
}
   0xc   :  { %s3193_s20 = smov 64   ;;  %s3194_s21 = smov 4  }
   0xd   :  { %35 = dma.hbm_to_vmem [thread:$0]  %s3578_s1, 6144, %s30_s16, [#allocation8], %s3193_s20, %s3193_s20, %s3194_s21  }
   0xe   :  { %s3133_s24 = scalar_lea.vmem %s18_s18, 128  ;;  %p3138_p6 = scmp.lt.s32.totalorder %s18_s18, %s18_s18 }
   0xf   :  { %p3134_p5 = scmp.ne.s32.totalorder %s18_s18, %s3133_s24  ;;  %p3139_p7 = scmp.lt.s32.totalorder %s3133_s24, %s3133_s24 }
  0x11   :  { %p3140_p8 = por %p3139_p7, %p3138_p6 }
  0x13   :  { %p3141_p9 = pnand %p3140_p8, %p3134_p5 }
  0x15   :  { %3144 = shalt.err (!%p3141_p9)
}
  0x16   :  { %23 = dma.hbm_to_vmem [thread:$0]  %s3577_s0, 128, %s18_s18, [#allocation5], %s3193_s20, %s3193_s20, %s3194_s21  }
  0x17   :  { %s3195_s27 = smov [#allocation9]  }
  0x18   :  { %s41_s28 = sshll.u32 %s3195_s27, 4  ;;  %s42_s28 = int_to_ptr.vmem [resolvable:$true] %s41_s28 }
  0x19   :  { %s3153_s29 = scalar_lea.vmem %s42_s28, 384  ;;  %p3158_p11 = scmp.lt.s32.totalorder %s42_s28, %s42_s28 }
  0x1a   :  { %p3154_p10 = scmp.ne.s32.totalorder %s42_s28, %s3153_s29  ;;  %p3159_p12 = scmp.lt.s32.totalorder %s3153_s29, %s3153_s29 }
  0x1c   :  { %p3160_p13 = por %p3159_p12, %p3158_p11 }
  0x1e   :  { %p3161_p0 = pnand %p3160_p13, %p3154_p10 }
  0x20   :  { %3164 = shalt.err (!%p3161_p0)
}
  0x21   :  { %s3196_s1 = smov 128   ;;  %s3197_s30 = smov 8  }
  0x22   :  { %47 = dma.hbm_to_vmem [thread:$0]  %s3579_s2, 384, %s42_s28, [#allocation8], %s3196_s1, %s3196_s1, %s3197_s30  }
  0x23   :  { %3185 = dma.done.wait [#allocation5], 128  }
  0x24   :  { %3186 = vsyncadd [#allocation5], 4294967168 }
  0x25   :  { %3187 = dma.done.wait [#allocation8], 6528  }
  0x26   :  { %3188 = vsyncadd [#allocation8], 4294960768  ;;  %v90_v0 = vld [vmem:[#allocation4] sm:$0xf]  ;;  %s3198_s0 = smov 96   ;;  %vm60_vm0 = vcmask 253952  }
  0x27   :  { %92 = vrot.lane.b32.xlu0 %v90_v0, %s3198_s0  ;;  %vm61_vm1 = vsmask.f32 256  ;;  %vm66_vm2 = vsmask.f32 7938  ;;  %vm71_vm3 = vcmask 516096   ;;  %v2993_v11 = vld [vmem:[#allocation7 + $0x8] sm:$0xff]  }
  0x28   :  { %vm3244_vm4 = vmand %vm60_vm0, %vm61_vm1  ;;  %v63_v3 = vld [vmem:[#allocation2] sm:$0x1]  ;;  %v68_v4 = vld [vmem:[#allocation2 + $0x4] sm:$0x1]  ;;  %v3199_v12 = vmov 0.0   ;;  %vm3200_vm8 = vmmov 0  }
  0x29   :  { %vm67_vm5 = vmand %vm60_vm0, %vm66_vm2  ;;  %v64_v5 = vsel %vm3244_vm4, 0, %v63_v3  ;;  %v73_v7 = vld [vmem:[#allocation3] sm:$0x1]  ;;  %v77_v8 = vld [vmem:[#allocation3 + $0x4] sm:$0x1]  ;;  %2732 = vmatprep.subr.bf16.mxu1 %v3199_v12  ;;  %2724 = vmatprep.subr.bf16.mxu0 %v3199_v12  ;;  %vm112_vm9 = vcmask 257024  }
  0x2a   :  { %vm3249_vm6 = vmand %vm71_vm3, %vm61_vm1  ;;  %v69_v6 = vsel %vm67_vm5, 0, %v68_v4  ;;  %65 = vst [vmem:[#allocation2] sm:$0x1] %v64_v5  ;;  %2733 = vmatpush3.bf16.msra.mxu1 %v2993_v11  ;;  %v2994_v14 = vld [vmem:[#allocation7] sm:$0xff]   ;;  %2736 = vmatprep.mubr.msk.bf16.mxu1 %vm3200_vm8, %v3199_v12  ;;  %v2995_v16 = vld [vmem:[#allocation7 + $0x28] sm:$0xff]   ;;  %vm155_vm11 = vcmask 261120  }
  0x2b   :  { %vm76_vm7 = vmand %vm71_vm3, %vm66_vm2  ;;  %70 = vst [vmem:[#allocation2 + $0x4] sm:$0x1] %v69_v6  ;;  %v74_v9 = vsel %vm3249_vm6, 0, %v73_v7  ;;  %2734 = vmatprep.subr.bf16.mxu1 %v3199_v12  ;;  %2728 = vmatprep.mubr.msk.bf16.mxu0 %vm3200_vm8, %v3199_v12  ;;  %v2996_v17 = vld [vmem:[#allocation7 + $0x20] sm:$0xff]   ;;  %v2998_v36 = vld [vmem:[#allocation7 + $0x48] sm:$0xff]   ;;  %vm861_vm12 = vcmask 523264  }
  0x2c   :  { %v78_v10 = vsel %vm76_vm7, 0, %v77_v8  ;;  %75 = vst [vmem:[#allocation3] sm:$0x1] %v74_v9  ;;  %2725 = vmatpush3.bf16.msra.mxu0 %v2995_v16  ;;  %vm3274_vm10 = vmand %vm112_vm9, %vm66_vm2  ;;  %v2999_v39 = vld [vmem:[#allocation7 + $0x40] sm:$0xff]   ;;  %v3001_v5 = vld [vmem:[#allocation7 + $0x68] sm:$0xff]   ;;  %vm927_vm13 = vcmask 519168  }
  0x2d   :  { %79 = vst [vmem:[#allocation3 + $0x4] sm:$0x1] %v78_v10  ;;  %2726 = vmatprep.subr.bf16.mxu0 %v3199_v12  ;;  %v3002_v8 = vld [vmem:[#allocation7 + $0x60] sm:$0xff]   ;;  %vm3390_vm14 = vmand %vm927_vm13, %vm66_vm2  ;;  %vm1235_vm15 = vcmask 64512   ;;  %v3066_v2 = vld [vmem:[#allocation7 + $0x170] sm:$0xff]   ;;  %s3201_s25 = smov [#allocation10]  }
  0x2e   :  { %2735 = vmatpush3.bf16.msra.mxu1 %v2994_v14  ;;  %v3003_v14 = vld [vmem:[#allocation7 + $0x88] sm:$0xff]   ;;  %v3054_v1 = vld [vmem:[#allocation7 + $0x100] sm:$0xff]   ;;  %s2497_s26 = sshll.u32 %s3201_s25, 4  ;;  %s2498_s26 = int_to_ptr.vmem [resolvable:$true] %s2497_s26 }
  0x2f   :  { %2748 = vmatprep.subr.bf16.mxu1 %v3199_v12  ;;  %s3165_s27 = scalar_lea.vmem %s2498_s26, 256  ;;  %p3170_p2 = scmp.lt.s32.totalorder %s2498_s26, %s2498_s26 }
  0x30   :  { %2727 = vmatpush3.bf16.msra.mxu0 %v2996_v17  ;;  %p3166_p1 = scmp.ne.s32.totalorder %s2498_s26, %s3165_s27  ;;  %p3171_p3 = scmp.lt.s32.totalorder %s3165_s27, %s3165_s27 }
  0x31   :  { %2740 = vmatprep.subr.bf16.mxu0 %v3199_v12  ;;  %v114_v24 = vld [vmem:[#allocation2] sm:$0xf] }
  0x32   :  { %v117_v25 = vld [vmem:[#allocation2 + $0x4] sm:$0x1]  ;;  %p3172_p4 = por %p3171_p3, %p3170_p2 }
  0x34   :  { %p3173_p5 = pnand %p3172_p4, %p3166_p1 }
  0x99   :  { %v93_v13 = vpop.permute.xlu0 %92 }
  0x9a   :  { %v95_v15 = vmax.bf16 %v93_v13, %v90_v0 }
  0x9c   :  { %97 = vrot.lane.b32.xlu0 %v95_v15, %s3193_s20 }
 0x10e   :  { %v98_v18 = vpop.permute.xlu0 %97 }
 0x10f   :  { %v3269_v19 = vmax.bf16 %v98_v18, %v95_v15  ;;  %v3004_v15 = vld [vmem:[#allocation7 + $0x80] sm:$0xff]  }
 0x111   :  { %v103_v20 = vshrl.u32 %v3269_v19, 16  ;;  %v106_v22 = vshll.u32 %v3269_v19, 16 }
 0x113   :  { %v105_v21 = vrot.slane %v103_v20, 7 }
 0x115   :  { %v108_v26 = vor.u32 %v106_v22, %v105_v21  ;;  %v109_v27 = vrot.slane %v105_v21, 4 }
 0x117   :  { %v115_v28 = vsel %vm3274_vm10, %v108_v26, %v114_v24  ;;  %v118_v29 = vsel %vm3244_vm4, %v109_v27, %v117_v25 }
 0x118   :  { %116 = vst [vmem:[#allocation2] sm:$0xf] %v115_v28  ;;  %119 = vst [vmem:[#allocation2 + $0x4] sm:$0x1] %v118_v29  ;;  %v3303_v28 = vld [vmem:[#allocation9] ss:$0 sm:$0xff] }
 0x11f   :  { %v3282_v30 = vld [vmem:[#allocation2] sm:$0xf]  ;;  %v125_v31 = vld [vmem:[#allocation2 + $0x4] sm:$0x1] }
 0x120   :  { %2737 = vmatmul.mubr.msk.bf16.vlgmr.msra.gmra.mxu1 %vm155_vm11, %v3282_v30  ;;  %v2511_v32 = vcombine.low %v3282_v30, %v125_v31  ;;  %v254_v38 = vld [vmem:[#allocation2] sm:$0xe] }
 0x121   :  { %2752 = vmatprep.mubr.msk.bf16.mxu1 %vm3200_vm8, %v3199_v12  ;;  %v2518_v40 = vcombine.low %v254_v38, %v125_v31  ;;  %2749 = vmatpush3.bf16.msra.mxu1 %v3003_v14  ;;  %v3305_v31 = vld [vmem:[#allocation9 + $0x1] ss:$0 sm:$0xff] }
 0x122   :  { %v139_v33 = vshll.u32 %v2511_v32, 16  ;;  %v137_v34 = vshrl.u32 %v2511_v32, 16  ;;  %2750 = vmatprep.subr.bf16.mxu1 %v3199_v12 }
 0x123   :  { %v263_v41 = vrot.slane %v2518_v40, 1 }
 0x124   :  { %v141_v35 = vrot.slane %v139_v33, 1 }
 0x125   :  { %2751 = vmatpush3.bf16.msra.mxu1 %v3004_v15 }
 0x126   :  { %v142_v37 = vor.u32 %v141_v35, %v137_v34  ;;  %2764 = vmatprep.subr.bf16.mxu1 %v3199_v12 }
 0x128   :  { %2729 = vmatmul.mubr.msk.bf16.vlgmr.msra.gmra.mxu0 %vm155_vm11, %v142_v37 }
 0x129   :  { %2741 = vmatpush3.bf16.msra.mxu0 %v2998_v36  ;;  %2744 = vmatprep.mubr.msk.bf16.mxu0 %vm3200_vm8, %v3199_v12 }
 0x12a   :  { %2742 = vmatprep.subr.bf16.mxu0 %v3199_v12 }
 0x12d   :  { %2743 = vmatpush3.bf16.msra.mxu0 %v2999_v39 }
 0x12e   :  { %2756 = vmatprep.subr.bf16.mxu0 %v3199_v12 }
 0x130   :  { %2745 = vmatmul.mubr.msk.bf16.vlgmr.msra.gmra.mxu0 %vm155_vm11, %v263_v41 }
 0x131   :  { %2760 = vmatprep.mubr.msk.bf16.mxu0 %vm3200_vm8, %v3199_v12  ;;  %2757 = vmatpush3.bf16.msra.mxu0 %v3001_v5 }
 0x132   :  { %2758 = vmatprep.subr.bf16.mxu0 %v3199_v12 }
 0x135   :  { %2759 = vmatpush3.bf16.msra.mxu0 %v3002_v8 }
 0x136   :  { %2772 = vmatprep.subr.bf16.mxu0 %v3199_v12 }
 0x1e0   :  { %v248_v42 = vpop.f32.mrf.mxu1 }
 0x1e2   :  { %v2738_v43 = vpop.f32.mrf.mxu1 }
 0x1e4   :  { %v251_v44 = vpop.f32.mrf.mxu1 }
 0x1e6   :  { %v2739_v45 = vpop.f32.mrf.mxu1 }
 0x1e8   :  { %v193_v46 = vpop.f32.mrf.mxu0 }
 0x1e9   :  { %v249_v50 = vadd.f32 %v248_v42, %v193_v46 }
 0x1ea   :  { %v2730_v47 = vpop.f32.mrf.mxu0 }
 0x1ec   :  { %v196_v48 = vpop.f32.mrf.mxu0 }
 0x1ee   :  { %v2731_v49 = vpop.f32.mrf.mxu0 }
 0x1ef   :  { %v387_v49 = vld [vmem:[#allocation2 + $0x4] sm:$0x1] }
 0x1f0   :  { %v313_v51 = vpop.f32.mrf.mxu0 }
 0x1f1   :  { %v319_v52 = vadd.f32 %v313_v51, %v249_v50 }
 0x1f2   :  { %v2746_v53 = vpop.f32.mrf.mxu0 }
 0x1f3   :  { %v320_v54 = vsel %vm155_vm11, %v319_v52, 0.0  ;;  %v331_v55 = vmul.f32 %v319_v52, %v319_v52 }
 0x1f4   :  { %321 = vadd.xlane.f32.xlu1 %v320_v54  ;;  %v316_v56 = vpop.f32.mrf.mxu0 }
 0x1f5   :  { %v332_v58 = vsel %vm155_vm11, %v331_v55, 0.0 }
 0x1f6   :  { %v2747_v57 = vpop.f32.mrf.mxu0 }
 0x1f8   :  { %333 = vadd.xlane.f32.xlu1 %v332_v58 }
 0x27d   :  { %v322_v59 = vpop.xlane.xlu1 %321 }
 0x27e   :  { %v323_v60 = vrot.slane %v322_v59, 4 }
 0x280   :  { %v324_v61 = vadd.f32 %v323_v60, %v322_v59  ;;  %v3007_v60 = vld [vmem:[#allocation7 + $0xa0] sm:$0xff]  }
 0x281   :  { %v334_v62 = vpop.xlane.xlu1 %333 }
 0x282   :  { %v325_v63 = vrot.slane %v324_v61, 2  ;;  %v335_v0 = vrot.slane %v334_v62, 4 }
 0x284   :  { %v336_v3 = vadd.f32 %v335_v0, %v334_v62  ;;  %v326_v4 = vadd.f32 %v325_v63, %v324_v61 }
 0x286   :  { %v337_v6 = vrot.slane %v336_v3, 2  ;;  %v327_v7 = vrot.slane %v326_v4, 1 }
 0x288   :  { %v328_v9 = vadd.f32 %v327_v7, %v326_v4  ;;  %v338_v10 = vadd.f32 %v337_v6, %v336_v3 }
 0x28a   :  { %2950 = vpush %v328_v9  ;;  %v339_v11 = vrot.slane %v338_v10, 1 }
 0x28c   :  { %v340_v13 = vadd.f32 %v339_v11, %v338_v10 }
 0x28e   :  { %2952 = vpush %v340_v13 }
 0x2bb   :  { %s2951_s2 = spop %2950 }
 0x2bc   :  { %v330_v16 = vstv %s2951_s2 }
 0x2bd   :  { %v343_v17 = vmul.f32 0.00390625, %v330_v16 }
 0x2bf   :  { %s2953_s7 = spop %2952  ;;  %v345_v20 = vmul.f32 %v343_v17, %v343_v17  ;;  %v348_v26 = vsub.f32 %v319_v52, %v343_v17 }
 0x2c0   :  { %v342_v18 = vstv %s2953_s7 }
 0x2c1   :  { %v344_v21 = vmul.f32 0.00390625, %v342_v18 }
 0x2c3   :  { %v346_v22 = vsub.f32 %v344_v21, %v345_v20 }
 0x2c5   :  { %v347_v24 = vmax.f32 %v346_v22, 0.0 }
 0x2c7   :  { %v349_v25 = vadd.f32 1e-05, %v347_v24 }
 0x2c9   :  { %3069 = vrsqrt.f32 %v349_v25 }
 0x2d6   :  { %v3070_v27 = vpop.eup %3069 }
 0x2d7   :  { %v351_v29 = vmul.f32 %v3070_v27, %v348_v26 }
 0x2d9   :  { %v356_v32 = vmul.f32 %v3303_v28, %v351_v29 }
 0x2db   :  { %v361_v33 = vadd.f32 %v3305_v31, %v356_v32 }
 0x2dd   :  { %v362_v34 = vmul.f32 %v361_v33, %v361_v33 }
 0x2df   :  { %v363_v35 = vmul.f32 %v362_v34, %v361_v33 }
 0x2e1   :  { %v364_v36 = vmul.f32 0.044715, %v363_v35 }
 0x2e3   :  { %v365_v37 = vadd.f32 %v364_v36, %v361_v33  ;;  %v3010_v36 = vld [vmem:[#allocation7 + $0xc0] sm:$0xff]  }
 0x2e5   :  { %v366_v38 = vmul.f32 0.7978846, %v365_v37 }
 0x2e7   :  { %3071 = vtanh.f32 %v366_v38 }
 0x2f4   :  { %v3072_v39 = vpop.eup %3071 }
 0x2f5   :  { %v368_v40 = vadd.f32 1.0, %v3072_v39 }
 0x2f7   :  { %v369_v41 = vmul.f32 0.5, %v368_v40  ;;  %v3012_v40 = vld [vmem:[#allocation7 + $0xe8] sm:$0xff]  }
 0x2f9   :  { %v370_v42 = vmul.f32 %v369_v41, %v361_v33  ;;  %v3009_v33 = vld [vmem:[#allocation7 + $0xc8] sm:$0xff]   ;;  %v3013_v41 = vld [vmem:[#allocation7 + $0xe0] sm:$0xff]  }
 0x2fb   :  { %v2630_v43 = vpack.c.bf16 %v370_v42, %v370_v42 }
 0x2fd   :  { %v376_v44 = vshrl.u32 %v2630_v43, 16  ;;  %v379_v46 = vshll.u32 %v2630_v43, 16 }
 0x2ff   :  { %v378_v45 = vrot.slane %v376_v44, 7 }
 0x301   :  { %v381_v47 = vor.u32 %v379_v46, %v378_v45  ;;  %v382_v48 = vrot.slane %v378_v45, 4 }
 0x303   :  { %v385_v50 = vsel %vm3274_vm10, %v381_v47, %v3282_v30  ;;  %v388_v51 = vsel %vm3244_vm4, %v382_v48, %v387_v49  ;;  %v3006_v30 = vld [vmem:[#allocation7 + $0xa8] sm:$0xff]  }
 0x304   :  { %389 = vst [vmem:[#allocation2 + $0x4] sm:$0x1] %v388_v51  ;;  %386 = vst [vmem:[#allocation2] sm:$0xf] %v385_v50 }
 0x30b   :  { %v3314_v52 = vld [vmem:[#allocation2] sm:$0xf]  ;;  %v396_v53 = vld [vmem:[#allocation2 + $0x4] sm:$0x1] }
 0x30c   :  { %2761 = vmatmul.mubr.msk.bf16.vlgmr.msra.gmra.mxu0 %vm155_vm11, %v3314_v52  ;;  %v2525_v54 = vcombine.low %v3314_v52, %v396_v53  ;;  %v524_v59 = vld [vmem:[#allocation2] sm:$0xe] }
 0x30d   :  { %2776 = vmatprep.mubr.msk.bf16.mxu0 %vm3200_vm8, %v3199_v12  ;;  %v2532_v61 = vcombine.low %v524_v59, %v396_v53  ;;  %2773 = vmatpush3.bf16.msra.mxu0 %v3012_v40  ;;  %v3335_v53 = vld [vmem:[#allocation9 + $0x2] ss:$0 sm:$0xff] }
 0x30e   :  { %v410_v55 = vshll.u32 %v2525_v54, 16  ;;  %v408_v56 = vshrl.u32 %v2525_v54, 16  ;;  %2774 = vmatprep.subr.bf16.mxu0 %v3199_v12 }
 0x30f   :  { %v533_v62 = vrot.slane %v2532_v61, 1 }
 0x310   :  { %v412_v57 = vrot.slane %v410_v55, 1  ;;  %v3337_v55 = vld [vmem:[#allocation9 + $0x3] ss:$0 sm:$0xff] }
 0x311   :  { %2775 = vmatpush3.bf16.msra.mxu0 %v3013_v41 }
 0x312   :  { %v413_v58 = vor.u32 %v412_v57, %v408_v56  ;;  %2788 = vmatprep.subr.bf16.mxu0 %v3199_v12  ;;  %v101_v57 = vunpack.c.l.bf16 %v3269_v19  ;;  %v658_v19 = vld [vmem:[#allocation2 + $0x4] sm:$0x1] }
 0x314   :  { %2753 = vmatmul.mubr.msk.bf16.vlgmr.msra.gmra.mxu1 %vm155_vm11, %v413_v58 }
 0x315   :  { %2765 = vmatpush3.bf16.msra.mxu1 %v3006_v30  ;;  %2768 = vmatprep.mubr.msk.bf16.mxu1 %vm3200_vm8, %v3199_v12 }
 0x316   :  { %2766 = vmatprep.subr.bf16.mxu1 %v3199_v12 }
 0x319   :  { %2767 = vmatpush3.bf16.msra.mxu1 %v3007_v60 }
 0x31a   :  { %2780 = vmatprep.subr.bf16.mxu1 %v3199_v12 }
 0x31c   :  { %2769 = vmatmul.mubr.msk.bf16.vlgmr.msra.gmra.mxu1 %vm155_vm11, %v533_v62 }
 0x31d   :  { %2784 = vmatprep.mubr.msk.bf16.mxu1 %vm3200_vm8, %v3199_v12  ;;  %2781 = vmatpush3.bf16.msra.mxu1 %v3009_v33 }
 0x31e   :  { %2782 = vmatprep.subr.bf16.mxu1 %v3199_v12 }
 0x321   :  { %2783 = vmatpush3.bf16.msra.mxu1 %v3010_v36 }
 0x322   :  { %2796 = vmatprep.subr.bf16.mxu1 %v3199_v12 }
 0x3cc   :  { %v518_v63 = vpop.f32.mrf.mxu0 }
 0x3ce   :  { %v2762_v0 = vpop.f32.mrf.mxu0 }
 0x3d0   :  { %v521_v3 = vpop.f32.mrf.mxu0 }
 0x3d2   :  { %v2763_v4 = vpop.f32.mrf.mxu0 }
 0x3d4   :  { %v463_v5 = vpop.f32.mrf.mxu1 }
 0x3d5   :  { %v519_v9 = vadd.f32 %v518_v63, %v463_v5 }
 0x3d6   :  { %v2754_v6 = vpop.f32.mrf.mxu1 }
 0x3d8   :  { %v466_v7 = vpop.f32.mrf.mxu1 }
 0x3da   :  { %v2755_v8 = vpop.f32.mrf.mxu1 }
 0x3dc   :  { %v583_v10 = vpop.f32.mrf.mxu1 }
 0x3dd   :  { %v589_v11 = vadd.f32 %v583_v10, %v519_v9 }
 0x3de   :  { %v2770_v13 = vpop.f32.mrf.mxu1 }
 0x3df   :  { %v590_v14 = vsel %vm155_vm11, %v589_v11, 0.0  ;;  %v601_v15 = vmul.f32 %v589_v11, %v589_v11 }
 0x3e0   :  { %v586_v16 = vpop.f32.mrf.mxu1  ;;  %591 = vadd.xlane.f32.xlu0 %v590_v14 }
 0x3e1   :  { %v602_v17 = vsel %vm155_vm11, %v601_v15, 0.0 }
 0x3e2   :  { %v2771_v18 = vpop.f32.mrf.mxu1  ;;  %603 = vadd.xlane.f32.xlu1 %v602_v17 }
 0x469   :  { %v592_v20 = vpop.xlane.xlu0 %591 }
 0x46a   :  { %v593_v21 = vrot.slane %v592_v20, 4 }
 0x46b   :  { %v604_v22 = vpop.xlane.xlu1 %603 }
 0x46c   :  { %v594_v24 = vadd.f32 %v593_v21, %v592_v20  ;;  %v605_v25 = vrot.slane %v604_v22, 4 }
 0x46e   :  { %v595_v26 = vrot.slane %v594_v24, 2  ;;  %v606_v27 = vadd.f32 %v605_v25, %v604_v22  ;;  %v3014_v22 = vld [vmem:[#allocation7 + $0x108] sm:$0xff]  }
 0x470   :  { %v607_v29 = vrot.slane %v606_v27, 2  ;;  %v596_v32 = vadd.f32 %v595_v26, %v594_v24 }
 0x472   :  { %v597_v34 = vrot.slane %v596_v32, 1  ;;  %v608_v35 = vadd.f32 %v607_v29, %v606_v27 }
 0x474   :  { %v598_v37 = vadd.f32 %v597_v34, %v596_v32  ;;  %v609_v38 = vrot.slane %v608_v35, 1 }
 0x476   :  { %2954 = vpush %v598_v37  ;;  %v610_v39 = vadd.f32 %v609_v38, %v608_v35 }
 0x478   :  { %2956 = vpush %v610_v39 }
 0x4a7   :  { %s2955_s8 = spop %2954 }
 0x4a8   :  { %v600_v42 = vstv %s2955_s8 }
 0x4a9   :  { %v613_v43 = vmul.f32 0.00390625, %v600_v42  ;;  %s2957_s9 = spop %2956 }
 0x4aa   :  { %v612_v44 = vstv %s2957_s9 }
 0x4ab   :  { %v615_v45 = vmul.f32 %v613_v43, %v613_v43  ;;  %v614_v46 = vmul.f32 0.00390625, %v612_v44  ;;  %v618_v50 = vsub.f32 %v589_v11, %v613_v43 }
 0x4ad   :  { %v616_v47 = vsub.f32 %v614_v46, %v615_v45 }
 0x4af   :  { %v617_v48 = vmax.f32 %v616_v47, 0.0 }
 0x4b1   :  { %v619_v49 = vadd.f32 1e-05, %v617_v48  ;;  %v1316_v48 = vld [vmem:[#allocation4 + $0x4] sm:$0xf] }
 0x4b3   :  { %3073 = vrsqrt.f32 %v619_v49  ;;  %v3017_v49 = vld [vmem:[#allocation7 + $0x138] sm:$0xff]  }
 0x4c0   :  { %v3074_v51 = vpop.eup %3073 }
 0x4c1   :  { %v621_v54 = vmul.f32 %v3074_v51, %v618_v50 }
 0x4c3   :  { %v626_v56 = vmul.f32 %v3335_v53, %v621_v54 }
 0x4c5   :  { %v631_v30 = vadd.f32 %v3337_v55, %v626_v56  ;;  %v3018_v56 = vld [vmem:[#allocation7 + $0x130] sm:$0xff]  }
 0x4c7   :  { %v632_v58 = vadd.f32 %v631_v30, %v101_v57 }
 0x4c9   :  { %v633_v59 = vmul.f32 %v632_v58, %v632_v58 }
 0x4cb   :  { %v634_v60 = vmul.f32 %v633_v59, %v632_v58  ;;  %v3019_v59 = vld [vmem:[#allocation7 + $0x158] sm:$0xff]  }
 0x4cd   :  { %v635_v61 = vmul.f32 0.044715, %v634_v60 }
 0x4cf   :  { %v636_v62 = vadd.f32 %v635_v61, %v632_v58 }
 0x4d1   :  { %v637_v63 = vmul.f32 0.7978846, %v636_v62  ;;  %v3020_v62 = vld [vmem:[#allocation7 + $0x128] sm:$0xff]  }
 0x4d3   :  { %3075 = vtanh.f32 %v637_v63 }
 0x4e0   :  { %v3076_v0 = vpop.eup %3075 }
 0x4e1   :  { %v639_v3 = vadd.f32 1.0, %v3076_v0  ;;  %v3021_v0 = vld [vmem:[#allocation7 + $0x150] sm:$0xff]  }
 0x4e3   :  { %v640_v4 = vmul.f32 0.5, %v639_v3 }
 0x4e5   :  { %v641_v5 = vmul.f32 %v640_v4, %v632_v58 }
 0x4e7   :  { %v2631_v6 = vpack.c.bf16 %v641_v5, %v641_v5 }
 0x4e9   :  { %v647_v7 = vshrl.u32 %v2631_v6, 16  ;;  %v650_v9 = vshll.u32 %v2631_v6, 16  ;;  %v3022_v6 = vld [vmem:[#allocation7 + $0x120] sm:$0xff]  }
 0x4eb   :  { %v649_v8 = vrot.slane %v647_v7, 7 }
 0x4ed   :  { %v652_v10 = vor.u32 %v650_v9, %v649_v8  ;;  %v653_v11 = vrot.slane %v649_v8, 4  ;;  %v3023_v9 = vld [vmem:[#allocation7 + $0x148] sm:$0xff]  }
 0x4ef   :  { %v656_v13 = vsel %vm3274_vm10, %v652_v10, %v3314_v52  ;;  %v659_v14 = vsel %vm3244_vm4, %v653_v11, %v658_v19  ;;  %v3015_v52 = vld [vmem:[#allocation7 + $0x100] sm:$0xff]  }
 0x4f0   :  { %657 = vst [vmem:[#allocation2] sm:$0xf] %v656_v13  ;;  %660 = vst [vmem:[#allocation2 + $0x4] sm:$0x1] %v659_v14  ;;  %v3025_v19 = vld [vmem:[#allocation7 + $0x140] sm:$0xff]  }
 0x4f7   :  { %v661_v15 = vld [vmem:[#allocation2] sm:$0xf]  ;;  %v667_v16 = vld [vmem:[#allocation2 + $0x4] sm:$0x1] }
 0x4f8   :  { %v2539_v17 = vcombine.low %v661_v15, %v667_v16  ;;  %2785 = vmatmul.mubr.msk.bf16.vlgmr.msra.gmra.mxu1 %vm155_vm11, %v661_v15  ;;  %v795_v25 = vld [vmem:[#allocation2] sm:$0xe] }
 0x4f9   :  { %2804 = vmatprep.mubr.msk.bf16.mxu1 %vm3200_vm8, %v3199_v12  ;;  %v2546_v26 = vcombine.low %v795_v25, %v667_v16  ;;  %2797 = vmatpush3.bf16.msra.mxu1 %v3019_v59  ;;  %v3376_v25 = vld [vmem:[#allocation9 + $0x4] ss:$0 sm:$0xff] }
 0x4fa   :  { %v681_v18 = vshll.u32 %v2539_v17, 16  ;;  %v679_v20 = vshrl.u32 %v2539_v17, 16  ;;  %2798 = vmatprep.subr.bf16.mxu1 %v3199_v12 }
 0x4fb   :  { %v804_v27 = vrot.slane %v2546_v26, 1  ;;  %v3378_v26 = vld [vmem:[#allocation9 + $0x5] ss:$0 sm:$0xff] }
 0x4fc   :  { %v683_v21 = vrot.slane %v681_v18, 1 }
 0x4fd   :  { %2799 = vmatpush3.bf16.msra.mxu1 %v3021_v0  ;;  %v1341_v0 = vld [vmem:[#allocation2 + $0x4] sm:$0x1] }
 0x4fe   :  { %v684_v24 = vor.u32 %v683_v21, %v679_v20  ;;  %2800 = vmatprep.subr.bf16.mxu1 %v3199_v12 }
 0x500   :  { %2777 = vmatmul.mubr.msk.bf16.vlgmr.msra.gmra.mxu0 %vm155_vm11, %v684_v24 }
 0x501   :  { %2789 = vmatpush3.bf16.msra.mxu0 %v3014_v22  ;;  %2792 = vmatprep.mubr.msk.bf16.mxu0 %vm3200_vm8, %v3199_v12 }
 0x502   :  { %2790 = vmatprep.subr.bf16.mxu0 %v3199_v12  ;;  %2801 = vmatpush3.bf16.msra.mxu1 %v3023_v9 }
 0x503   :  { %2802 = vmatprep.subr.bf16.mxu1 %v3199_v12 }
 0x505   :  { %2791 = vmatpush3.bf16.msra.mxu0 %v3015_v52 }
 0x506   :  { %2808 = vmatprep.subr.bf16.mxu0 %v3199_v12  ;;  %2803 = vmatpush3.bf16.msra.mxu1 %v3025_v19 }
 0x507   :  { %2820 = vmatprep.subr.bf16.mxu1 %v3199_v12 }
 0x508   :  { %2793 = vmatmul.mubr.msk.bf16.vlgmr.msra.gmra.mxu0 %vm155_vm11, %v804_v27 }
 0x509   :  { %2816 = vmatprep.mubr.msk.bf16.mxu0 %vm3200_vm8, %v3199_v12  ;;  %2809 = vmatpush3.bf16.msra.mxu0 %v3017_v49 }
 0x50a   :  { %2810 = vmatprep.subr.bf16.mxu0 %v3199_v12 }
 0x50d   :  { %2811 = vmatpush3.bf16.msra.mxu0 %v3018_v56 }
 0x50e   :  { %2812 = vmatprep.subr.bf16.mxu0 %v3199_v12 }
 0x511   :  { %2813 = vmatpush3.bf16.msra.mxu0 %v3020_v62 }
 0x512   :  { %2814 = vmatprep.subr.bf16.mxu0 %v3199_v12 }
 0x515   :  { %2815 = vmatpush3.bf16.msra.mxu0 %v3022_v6 }
 0x516   :  { %2832 = vmatprep.subr.mxu0 %v3199_v12 }
 0x5b8   :  { %v789_v29 = vpop.f32.mrf.mxu1 }
 0x5ba   :  { %v2786_v32 = vpop.f32.mrf.mxu1 }
 0x5bc   :  { %v792_v33 = vpop.f32.mrf.mxu1 }
 0x5be   :  { %v2787_v34 = vpop.f32.mrf.mxu1 }
 0x5c0   :  { %v734_v35 = vpop.f32.mrf.mxu0 }
 0x5c1   :  { %v790_v39 = vadd.f32 %v789_v29, %v734_v35 }
 0x5c2   :  { %v2778_v36 = vpop.f32.mrf.mxu0 }
 0x5c4   :  { %v737_v37 = vpop.f32.mrf.mxu0 }
 0x5c5   :  { %v1227_v37 = vld [vmem:[%s3580_s3] sm:$0x1] }
 0x5c6   :  { %v2779_v38 = vpop.f32.mrf.mxu0 }
 0x5c7   :  { %v2572_v38 = vmul.f32 -1.442695, %v1227_v37 }
 0x5c8   :  { %v854_v40 = vpop.f32.mrf.mxu0 }
 0x5c9   :  { %v3358_v41 = vadd.f32 %v854_v40, %v790_v39 }
 0x5ca   :  { %v2794_v42 = vpop.f32.mrf.mxu0 }
 0x5cb   :  { %v862_v43 = vsel %vm861_vm12, %v3358_v41, 0.0  ;;  %v873_v44 = vmul.f32 %v3358_v41, %v3358_v41 }
 0x5cc   :  { %863 = vadd.xlane.f32.xlu1 %v862_v43  ;;  %v857_v45 = vpop.f32.mrf.mxu0 }
 0x5cd   :  { %v874_v47 = vsel %vm861_vm12, %v873_v44, 0.0 }
 0x5ce   :  { %v2795_v46 = vpop.f32.mrf.mxu0 }
 0x5d0   :  { %875 = vadd.xlane.f32.xlu1 %v874_v47 }
 0x5e1   :  { %1318 = vrot.lane.b32.xlu1 %v1316_v48, %s3198_s0 }
 0x655   :  { %v864_v50 = vpop.xlane.xlu1 %863 }
 0x656   :  { %v865_v51 = vrot.slane %v864_v50, 4 }
 0x658   :  { %v866_v54 = vadd.f32 %v865_v51, %v864_v50 }
 0x659   :  { %v876_v57 = vpop.xlane.xlu1 %875 }
 0x65a   :  { %v867_v30 = vrot.slane %v866_v54, 2  ;;  %v877_v58 = vrot.slane %v876_v57, 4 }
 0x65c   :  { %v878_v60 = vadd.f32 %v877_v58, %v876_v57  ;;  %v868_v61 = vadd.f32 %v867_v30, %v866_v54  ;;  %v929_v30 = vld [vmem:[#allocation3] sm:$0xf]  ;;  %v932_v58 = vld [vmem:[#allocation3 + $0x4] sm:$0x1]  ;;  %v3065_v57 = vld [vmem:[#allocation7 + $0x178] sm:$0xff]  }
 0x65d   :  { %v1319_v63 = vpop.permute.xlu1 %1318 }
 0x65e   :  { %v879_v3 = vrot.slane %v878_v60, 2  ;;  %v1321_v4 = vmax.bf16 %v1319_v63, %v1316_v48  ;;  %v869_v5 = vrot.slane %v868_v61, 1  ;;  %v1338_v63 = vld [vmem:[#allocation2] sm:$0xf] }
 0x660   :  { %1323 = vrot.lane.b32.xlu1 %v1321_v4, %s3193_s20  ;;  %v870_v7 = vadd.f32 %v869_v5, %v868_v61  ;;  %v880_v8 = vadd.f32 %v879_v3, %v878_v60 }
 0x662   :  { %2958 = vpush %v870_v7  ;;  %v881_v10 = vrot.slane %v880_v8, 1  ;;  %v3402_v7 = vld [vmem:[#allocation9 + $0x9] sm:$0xff] }
 0x664   :  { %v882_v11 = vadd.f32 %v881_v10, %v880_v8 }
 0x666   :  { %2960 = vpush %v882_v11 }
 0x693   :  { %s2959_s10 = spop %2958 }
 0x694   :  { %v872_v13 = vstv %s2959_s10 }
 0x695   :  { %v885_v14 = vmul.f32 0.001953125, %v872_v13 }
 0x697   :  { %s2961_s11 = spop %2960  ;;  %v887_v16 = vmul.f32 %v885_v14, %v885_v14  ;;  %v890_v22 = vsub.f32 %v3358_v41, %v885_v14 }
 0x698   :  { %v884_v15 = vstv %s2961_s11 }
 0x699   :  { %v886_v17 = vmul.f32 0.001953125, %v884_v15 }
 0x69b   :  { %v888_v18 = vsub.f32 %v886_v17, %v887_v16 }
 0x69d   :  { %v889_v20 = vmax.f32 %v888_v18, 0.0 }
 0x69f   :  { %v891_v21 = vadd.f32 1e-05, %v889_v20  ;;  %v3026_v20 = vld [vmem:[#allocation7 + $0x178] sm:$0xff]  }
 0x6a1   :  { %3077 = vrsqrt.f32 %v891_v21  ;;  %v3027_v21 = vld [vmem:[#allocation7 + $0x28] sm:$0xff]  }
 0x6ae   :  { %v3078_v24 = vpop.eup %3077 }
 0x6af   :  { %v893_v52 = vmul.f32 %v3078_v24, %v890_v22 }
 0x6b1   :  { %v898_v27 = vmul.f32 %v3376_v25, %v893_v52  ;;  %v3028_v52 = vld [vmem:[#allocation7 + $0x170] sm:$0xff]  }
 0x6b3   :  { %v903_v29 = vadd.f32 %v3378_v26, %v898_v27  ;;  %v3029_v27 = vld [vmem:[#allocation7 + $0x20] sm:$0xff]  }
 0x6b5   :  { %v904_v32 = vmul.f32 %v903_v29, %v903_v29 }
 0x6b7   :  { %v905_v33 = vmul.f32 %v904_v32, %v903_v29 }
 0x6b9   :  { %v906_v34 = vmul.f32 0.044715, %v905_v33  ;;  %v3031_v33 = vld [vmem:[#allocation7 + $0x168] sm:$0xff]  }
 0x6bb   :  { %v907_v35 = vadd.f32 %v906_v34, %v903_v29  ;;  %v3032_v34 = vld [vmem:[#allocation7 + $0x48] sm:$0xff]  }
 0x6bd   :  { %v908_v36 = vmul.f32 0.7978846, %v907_v35 }
 0x6bf   :  { %3079 = vtanh.f32 %v908_v36 }
 0x6c0   :  { %3081 = vpow2.f32 %v2572_v38  ;;  %v3033_v38 = vld [vmem:[#allocation7 + $0x160] sm:$0xff]  }
 0x6cc   :  { %v3080_v39 = vpop.eup %3079 }
 0x6cd   :  { %v910_v40 = vadd.f32 1.0, %v3080_v39  ;;  %v3082_v42 = vpop.eup %3081  ;;  %v3034_v39 = vld [vmem:[#allocation7 + $0x40] sm:$0xff]  }
 0x6ce   :  { %v1231_v47 = vadd.f32 1.0, %v3082_v42  ;;  %v3037_v42 = vld [vmem:[#allocation7 + $0x8] sm:$0xff]  }
 0x6cf   :  { %v911_v41 = vmul.f32 0.5, %v910_v40 }
 0x6d0   :  { %3083 = vrcp.f32 %v1231_v47 }
 0x6d1   :  { %v912_v43 = vmul.f32 %v911_v41, %v903_v29 }
 0x6d2   :  { %v1324_v44 = vpop.permute.xlu1 %1323 }
 0x6d3   :  { %v2632_v45 = vpack.c.bf16 %v912_v43, %v912_v43  ;;  %v3385_v46 = vmax.bf16 %v1324_v44, %v1321_v4 }
 0x6d5   :  { %v918_v48 = vshrl.u32 %v2632_v45, 16  ;;  %v1329_v49 = vshrl.u32 %v3385_v46, 16  ;;  %v921_v51 = vshll.u32 %v2632_v45, 16  ;;  %v1332_v56 = vshll.u32 %v3385_v46, 16  ;;  %v3038_v45 = vld [vmem:[#allocation7] sm:$0xff]  }
 0x6d7   :  { %v920_v50 = vrot.slane %v918_v48, 7  ;;  %v1331_v54 = vrot.slane %v1329_v49, 7 }
 0x6d9   :  { %v923_v59 = vor.u32 %v921_v51, %v920_v50  ;;  %v924_v60 = vrot.slane %v920_v50, 4  ;;  %v1334_v61 = vor.u32 %v1332_v56, %v1331_v54  ;;  %v1335_v62 = vrot.slane %v1331_v54, 4 }
 0x6db   :  { %v930_v3 = vsel %vm3390_vm14, %v923_v59, %v929_v30  ;;  %v933_v4 = vsel %vm3249_vm6, %v924_v60, %v932_v58  ;;  %v1339_v5 = vsel %vm3274_vm10, %v1334_v61, %v1338_v63  ;;  %v1342_v6 = vsel %vm3244_vm4, %v1335_v62, %v1341_v0 }
 0x6dc   :  { %931 = vst [vmem:[#allocation3] sm:$0xf] %v930_v3  ;;  %934 = vst [vmem:[#allocation3 + $0x4] sm:$0x1] %v933_v4 }
 0x6dd   :  { %1340 = vst [vmem:[#allocation2] sm:$0xf] %v1339_v5  ;;  %1343 = vst [vmem:[#allocation2 + $0x4] sm:$0x1] %v1342_v6  ;;  %v3084_v13 = vpop.eup %3083 }
 0x6de   :  { %v1234_v18 = vmul.f32 %v3084_v13, %v1227_v37 }
 0x6e3   :  { %v935_v8 = vld [vmem:[#allocation3] sm:$0xf]  ;;  %v945_v9 = vld [vmem:[#allocation3 + $0x4] sm:$0x1] }
 0x6e4   :  { %v3404_v10 = vld [vmem:[#allocation2] sm:$0xf]  ;;  %v2553_v11 = vcombine.low %v935_v8, %v945_v9  ;;  %2817 = vmatmul.mubr.msk.bf16.vlgmr.msra.gmra.mxu0 %vm861_vm12, %v935_v8  ;;  %v1349_v19 = vld [vmem:[#allocation2 + $0x4] sm:$0x1]  ;;  %v1101_v36 = vld [vmem:[#allocation3] sm:$0xe] }
 0x6e5   :  { %2833 = vmatpush3.msra.mxu0 %v3402_v7  ;;  %2834 = vmatprep.mubr.msk.f32.mxu0 %vm3200_vm8, %v3199_v12  ;;  %v2574_v15 = vcombine.low %v3404_v10, %v1349_v19  ;;  %v1476_v37 = vld [vmem:[#allocation2] sm:$0xe]  ;;  %v2564_v40 = vcombine.low %v1101_v36, %v945_v9 }
 0x6e6   :  { %v963_v14 = vshll.u32 %v2553_v11, 16  ;;  %2837 = vmatprep.subr.bf16.mxu0 %v3199_v12  ;;  %v961_v16 = vshrl.u32 %v2553_v11, 16  ;;  %v2581_v41 = vcombine.low %v1476_v37, %v1349_v19 }
 0x6e7   :  { %v1362_v24 = vshll.u32 %v2574_v15, 16  ;;  %v1360_v32 = vshrl.u32 %v2574_v15, 16  ;;  %v1114_v43 = vrot.slane %v2564_v40, 1 }
 0x6e8   :  { %v965_v17 = vrot.slane %v963_v14, 1  ;;  %v1484_v44 = vrot.slane %v2581_v41, 1 }
 0x6e9   :  { %v1364_v29 = vrot.slane %v1362_v24, 1 }
 0x6ea   :  { %v966_v22 = vor.u32 %v965_v17, %v961_v16 }
 0x6eb   :  { %v1365_v35 = vor.u32 %v1364_v29, %v1360_v32 }
 0x6ec   :  { %2805 = vmatmul.mubr.msk.bf16.vlgmr.msra.gmra.mxu1 %vm861_vm12, %v966_v22  ;;  %2835 = vmatmul.mubr.msk.f32.vlgmr.msra.gmra.mxu0 %vm1235_vm15, %v1234_v18 }
 0x6ed   :  { %2821 = vmatpush3.bf16.msra.mxu1 %v3026_v20  ;;  %2838 = vmatpush3.bf16.msra.mxu0 %v3027_v21 }
 0x6ee   :  { %2822 = vmatprep.subr.bf16.mxu1 %v3199_v12  ;;  %2839 = vmatprep.subr.bf16.mxu0 %v3199_v12 }
 0x6ef   :  { %2841 = vmatprep.mubr.msk.bf16.mxu0 %vm3200_vm8, %v3199_v12  ;;  %2828 = vmatprep.mubr.msk.bf16.mxu1 %vm3200_vm8, %v3199_v12 }
 0x6f1   :  { %2823 = vmatpush3.bf16.msra.mxu1 %v3028_v52  ;;  %2840 = vmatpush3.bf16.msra.mxu0 %v3029_v27 }
 0x6f2   :  { %2824 = vmatprep.subr.bf16.mxu1 %v3199_v12  ;;  %2853 = vmatprep.subr.bf16.mxu0 %v3199_v12 }
 0x6f4   :  { %2842 = vmatmul.mubr.msk.bf16.vlgmr.msra.gmra.mxu0 %vm155_vm11, %v1365_v35 }
 0x6f5   :  { %2825 = vmatpush3.bf16.msra.mxu1 %v3031_v33  ;;  %2854 = vmatpush3.bf16.msra.mxu0 %v3032_v34 }
 0x6f6   :  { %2826 = vmatprep.subr.bf16.mxu1 %v3199_v12  ;;  %2855 = vmatprep.subr.bf16.mxu0 %v3199_v12 }
 0x6f7   :  { %2857 = vmatprep.mubr.msk.bf16.mxu0 %vm3200_vm8, %v3199_v12 }
 0x6f9   :  { %2827 = vmatpush3.bf16.msra.mxu1 %v3033_v38  ;;  %2856 = vmatpush3.bf16.msra.mxu0 %v3034_v39 }
 0x6fa   :  { %2845 = vmatprep.subr.bf16.mxu1 %v3199_v12  ;;  %2869 = vmatprep.subr.bf16.mxu0 %v3199_v12 }
 0x6fc   :  { %2829 = vmatmul.mubr.msk.bf16.vlgmr.msra.gmra.mxu1 %vm861_vm12, %v1114_v43  ;;  %2858 = vmatmul.mubr.msk.bf16.vlgmr.msra.gmra.mxu0 %vm155_vm11, %v1484_v44 }
 0x6fd   :  { %2846 = vmatpush3.bf16.msra.mxu1 %v3037_v42  ;;  %2849 = vmatprep.mubr.msk.bf16.mxu1 %vm3200_vm8, %v3199_v12 }
 0x6fe   :  { %2847 = vmatprep.subr.bf16.mxu1 %v3199_v12  ;;  %2873 = vmatprep.mubr.msk.bf16.mxu0 %vm3200_vm8, %v3199_v12 }
 0x701   :  { %2848 = vmatpush3.bf16.msra.mxu1 %v3038_v45 }
 0x702   :  { %2861 = vmatprep.subr.bf16.mxu1 %v3199_v12 }
 0x704   :  { %2850 = vmatmul.mubr.msk.bf16.vlgmr.msra.gmra.mxu1 %vm155_vm11, %v3404_v10 }
 0x705   :  { %2865 = vmatprep.mubr.msk.bf16.mxu1 %vm3200_vm8, %v3199_v12 }
 0x7a4   :  { %v1095_v47 = vpop.f32.mrf.mxu0 }
 0x7a6   :  { %v2818_v48 = vpop.f32.mrf.mxu0 }
 0x7a8   :  { %v1098_v49 = vpop.f32.mrf.mxu0 }
 0x7aa   :  { %v2819_v50 = vpop.f32.mrf.mxu0 }
 0x7ac   :  { %v1028_v51 = vpop.f32.mrf.mxu1  ;;  %v3441_v54 = vpop.f32.mrf.mxu0 }
 0x7ad   :  { %v1096_v0 = vadd.f32 %v1095_v47, %v1028_v51 }
 0x7ae   :  { %v2806_v56 = vpop.f32.mrf.mxu1  ;;  %v2836_v30 = vpop.f32.mrf.mxu0 }
 0x7b0   :  { %v1031_v58 = vpop.f32.mrf.mxu1 }
 0x7b2   :  { %v2807_v59 = vpop.f32.mrf.mxu1 }
 0x7b3   :  { %v3039_v59 = vld [vmem:[#allocation7 + $0x68] sm:$0xff]  }
 0x7b4   :  { %v1415_v60 = vpop.f32.mrf.mxu0  ;;  %2870 = vmatpush3.bf16.msra.mxu0 %v3039_v59 }
 0x7b5   :  { %2871 = vmatprep.subr.bf16.mxu0 %v3199_v12 }
 0x7b6   :  { %v2843_v61 = vpop.f32.mrf.mxu0 }
 0x7b8   :  { %v1418_v62 = vpop.f32.mrf.mxu0 }
 0x7b9   :  { %v3040_v62 = vld [vmem:[#allocation7 + $0x60] sm:$0xff]  }
 0x7ba   :  { %v2844_v63 = vpop.f32.mrf.mxu0  ;;  %2872 = vmatpush3.bf16.msra.mxu0 %v3040_v62 }
 0x7bb   :  { %2885 = vmatprep.subr.bf16.mxu0 %v3199_v12 }
 0x7bc   :  { %v1176_v3 = vpop.f32.mrf.mxu1  ;;  %v1534_v4 = vpop.f32.mrf.mxu0 }
 0x7bd   :  { %v3443_v5 = vadd.f32 %v1176_v3, %v1096_v0 }
 0x7be   :  { %v2830_v6 = vpop.f32.mrf.mxu1  ;;  %v2859_v8 = vpop.f32.mrf.mxu0 }
 0x7bf   :  { %v1183_v9 = vsel %vm861_vm12, %v3443_v5, 0.0  ;;  %v1194_v11 = vmul.f32 %v3443_v5, %v3443_v5  ;;  %v3042_v6 = vld [vmem:[#allocation7 + $0x88] sm:$0xff]   ;;  %v3043_v8 = vld [vmem:[#allocation7 + $0x80] sm:$0xff]  }
 0x7c0   :  { %v1179_v19 = vpop.f32.mrf.mxu1  ;;  %1184 = vadd.xlane.f32.xlu0 %v1183_v9  ;;  %v1537_v13 = vpop.f32.mrf.mxu0  ;;  %2862 = vmatpush3.bf16.msra.mxu1 %v3042_v6 }
 0x7c1   :  { %v1195_v14 = vsel %vm861_vm12, %v1194_v11, 0.0  ;;  %2863 = vmatprep.subr.bf16.mxu1 %v3199_v12 }
 0x7c2   :  { %v2831_v15 = vpop.f32.mrf.mxu1  ;;  %1196 = vadd.xlane.f32.xlu1 %v1195_v14  ;;  %v2860_v16 = vpop.f32.mrf.mxu0 }
 0x7c4   :  { %v1470_v17 = vpop.f32.mrf.mxu1  ;;  %2864 = vmatpush3.bf16.msra.mxu1 %v3043_v8 }
 0x7c5   :  { %v1471_v18 = vadd.f32 %v1470_v17, %v1415_v60  ;;  %2877 = vmatprep.subr.bf16.mxu1 %v3199_v12 }
 0x7c6   :  { %v2851_v20 = vpop.f32.mrf.mxu1 }
 0x7c7   :  { %v3450_v21 = vadd.f32 %v1534_v4, %v1471_v18 }
 0x7c8   :  { %v1473_v22 = vpop.f32.mrf.mxu1 }
 0x7c9   :  { %v1541_v24 = vsel %vm155_vm11, %v3450_v21, 0.0  ;;  %v1552_v52 = vmul.f32 %v3450_v21, %v3450_v21 }
 0x7ca   :  { %v2852_v27 = vpop.f32.mrf.mxu1  ;;  %1542 = vadd.xlane.f32.xlu0 %v1541_v24 }
 0x7cb   :  { %v1553_v29 = vsel %vm155_vm11, %v1552_v52, 0.0  ;;  %v1309_v27 = vlaneseq }
 0x7ce   :  { %1554 = vadd.xlane.f32.xlu0 %v1553_v29 }
 0x849   :  { %v1185_v32 = vpop.xlane.xlu0 %1184 }
 0x84a   :  { %v1186_v33 = vrot.slane %v1185_v32, 4 }
 0x84b   :  { %v1197_v34 = vpop.xlane.xlu1 %1196 }
 0x84c   :  { %v1187_v35 = vadd.f32 %v1186_v33, %v1185_v32  ;;  %v1198_v36 = vrot.slane %v1197_v34, 4  ;;  %v3461_v33 = vshrl.u32 %v1309_v27, 7 }
 0x84e   :  { %v1188_v37 = vrot.slane %v1187_v35, 2  ;;  %v1199_v38 = vadd.f32 %v1198_v36, %v1197_v34 }
 0x850   :  { %v1200_v39 = vrot.slane %v1199_v38, 2  ;;  %v1189_v40 = vadd.f32 %v1188_v37, %v1187_v35  ;;  %v3463_v35 = vld [vmem:[#allocation9 + $0x8] sm:$0x1] }
 0x852   :  { %v1201_v41 = vadd.f32 %v1200_v39, %v1199_v38  ;;  %v1190_v42 = vrot.slane %v1189_v40, 1  ;;  %v3466_v38 = vld [vmem:[#allocation9 + $0x6] ss:$0 sm:$0xff]  ;;  %v1306_v39 = vadd.f32 %v3441_v54, %v3463_v35 }
 0x853   :  { %v1543_v43 = vpop.xlane.xlu0 %1542 }
 0x854   :  { %v1544_v44 = vrot.slane %v1543_v43, 4  ;;  %v1191_v45 = vadd.f32 %v1190_v42, %v1189_v40  ;;  %v1202_v47 = vrot.slane %v1201_v41, 1  ;;  %v1311_v40 = vsub.s32 0, %v3461_v33  ;;  %v3471_v42 = vld [vmem:[#allocation9 + $0x7] ss:$0 sm:$0xff] }
 0x856   :  { %v1545_v48 = vadd.f32 %v1544_v44, %v1543_v43  ;;  %2962 = vpush %v1191_v45  ;;  %v1203_v49 = vadd.f32 %v1202_v47, %v1201_v41  ;;  %v1312_v44 = vrot.slane %v1306_v39, %v1311_v40 }
 0x857   :  { %v1555_v50 = vpop.xlane.xlu0 %1554 }
 0x858   :  { %v1546_v51 = vrot.slane %v1545_v48, 2  ;;  %v1556_v56 = vrot.slane %v1555_v50, 4  ;;  %2964 = vpush %v1203_v49 }
 0x85a   :  { %v1557_v30 = vadd.f32 %v1556_v56, %v1555_v50  ;;  %v1547_v58 = vadd.f32 %v1546_v51, %v1545_v48 }
 0x85c   :  { %v1558_v60 = vrot.slane %v1557_v30, 2  ;;  %v1548_v61 = vrot.slane %v1547_v58, 1 }
 0x85e   :  { %v1549_v63 = vadd.f32 %v1548_v61, %v1547_v58  ;;  %v1559_v0 = vadd.f32 %v1558_v60, %v1557_v30 }
 0x860   :  { %2966 = vpush %v1549_v63  ;;  %v1560_v3 = vrot.slane %v1559_v0, 1 }
 0x862   :  { %v1561_v4 = vadd.f32 %v1560_v3, %v1559_v0 }
 0x864   :  { %2968 = vpush %v1561_v4 }
 0x887   :  { %s2963_s14 = spop %2962 }
 0x888   :  { %v1193_v9 = vstv %s2963_s14 }
 0x889   :  { %v1206_v11 = vmul.f32 0.001953125, %v1193_v9  ;;  %s2965_s15 = spop %2964  ;;  %v1600_v9 = vld [vmem:[#allocation2 + $0x4] sm:$0x1] }
 0x88a   :  { %v1205_v19 = vstv %s2965_s15 }
 0x88b   :  { %v1208_v13 = vmul.f32 %v1206_v11, %v1206_v11  ;;  %v1207_v14 = vmul.f32 0.001953125, %v1205_v19  ;;  %v1211_v36 = vsub.f32 %v3443_v5, %v1206_v11 }
 0x88d   :  { %v1209_v15 = vsub.f32 %v1207_v14, %v1208_v13 }
 0x88f   :  { %v1210_v16 = vmax.f32 %v1209_v15, 0.0 }
 0x891   :  { %v1212_v17 = vadd.f32 1e-05, %v1210_v16  ;;  %s2967_s16 = spop %2966 }
 0x892   :  { %v1551_v18 = vstv %s2967_s16 }
 0x893   :  { %3085 = vrsqrt.f32 %v1212_v17  ;;  %v1564_v20 = vmul.f32 0.00390625, %v1551_v18 }
 0x895   :  { %s2969_s17 = spop %2968  ;;  %v1566_v24 = vmul.f32 %v1564_v20, %v1564_v20  ;;  %v1569_v47 = vsub.f32 %v3450_v21, %v1564_v20  ;;  %v3045_v20 = vld [vmem:[#allocation7 + $0xa0] sm:$0xff]  }
 0x896   :  { %v1563_v22 = vstv %s2969_s17 }
 0x897   :  { %v1565_v52 = vmul.f32 0.00390625, %v1563_v22 }
 0x899   :  { %v1567_v29 = vsub.f32 %v1565_v52, %v1566_v24 }
 0x89b   :  { %v1568_v32 = vmax.f32 %v1567_v29, 0.0 }
 0x89d   :  { %v1570_v34 = vadd.f32 1e-05, %v1568_v32 }
 0x89f   :  { %3087 = vrsqrt.f32 %v1570_v34 }
 0x8a0   :  { %v3086_v37 = vpop.eup %3085 }
 0x8a1   :  { %v1214_v41 = vmul.f32 %v3086_v37, %v1211_v36 }
 0x8a3   :  { %v1219_v43 = vmul.f32 %v3466_v38, %v1214_v41 }
 0x8a5   :  { %v1224_v45 = vadd.f32 %v3471_v42, %v1219_v43 }
 0x8a7   :  { %v1313_v5 = vadd.f32 %v1312_v44, %v1224_v45 }
 0x8a9   :  { %1314 = vst.msk [vmem:[#allocation10] sm:$0xff] %vm861_vm12, %v1313_v5 }
 0x8ac   :  { %v3088_v48 = vpop.eup %3087 }
 0x8ad   :  { %v1572_v49 = vmul.f32 %v3088_v48, %v1569_v47 }
 0x8af   :  { %v1573_v54 = vmul.f32 %v3303_v28, %v1572_v49 }
 0x8b1   :  { %v1574_v50 = vadd.f32 %v3305_v31, %v1573_v54 }
 0x8b3   :  { %v1575_v51 = vmul.f32 %v1574_v50, %v1574_v50 }
 0x8b5   :  { %v1576_v56 = vmul.f32 %v1575_v51, %v1574_v50 }
 0x8b7   :  { %v1577_v30 = vmul.f32 0.044715, %v1576_v56 }
 0x8b9   :  { %v1578_v58 = vadd.f32 %v1577_v30, %v1574_v50 }
 0x8bb   :  { %v1579_v59 = vmul.f32 0.7978846, %v1578_v58 }
 0x8bd   :  { %3089 = vtanh.f32 %v1579_v59 }
 0x8ca   :  { %v3090_v60 = vpop.eup %3089 }
 0x8cb   :  { %v1581_v61 = vadd.f32 1.0, %v3090_v60 }
 0x8cd   :  { %v1582_v62 = vmul.f32 0.5, %v1581_v61 }
 0x8cf   :  { %v1583_v63 = vmul.f32 %v1582_v62, %v1574_v50 }
 0x8d1   :  { %v2633_v0 = vpack.c.bf16 %v1583_v63, %v1583_v63 }
 0x8d3   :  { %v1589_v3 = vshrl.u32 %v2633_v0, 16  ;;  %v1592_v21 = vshll.u32 %v2633_v0, 16  ;;  %v3047_v0 = vld [vmem:[#allocation7 + $0xc8] sm:$0xff]  }
 0x8d5   :  { %v1591_v4 = vrot.slane %v1589_v3, 7 }
 0x8d7   :  { %v1594_v6 = vor.u32 %v1592_v21, %v1591_v4  ;;  %v1595_v8 = vrot.slane %v1591_v4, 4  ;;  %v3048_v21 = vld [vmem:[#allocation7 + $0xc0] sm:$0xff]  }
 0x8d9   :  { %v1598_v28 = vsel %vm3274_vm10, %v1594_v6, %v3404_v10  ;;  %v1601_v31 = vsel %vm3244_vm4, %v1595_v8, %v1600_v9  ;;  %v3044_v10 = vld [vmem:[#allocation7 + $0xa8] sm:$0xff]  }
 0x8da   :  { %1599 = vst [vmem:[#allocation2] sm:$0xf] %v1598_v28  ;;  %1602 = vst [vmem:[#allocation2 + $0x4] sm:$0x1] %v1601_v31  ;;  %v3051_v9 = vld [vmem:[#allocation7 + $0xe8] sm:$0xff]   ;;  %v3052_v28 = vld [vmem:[#allocation7 + $0xe0] sm:$0xff]  }
 0x8e1   :  { %v3486_v11 = vld [vmem:[#allocation2] sm:$0xf]  ;;  %v1608_v19 = vld [vmem:[#allocation2 + $0x4] sm:$0x1] }
 0x8e2   :  { %v2586_v13 = vcombine.low %v3486_v11, %v1608_v19  ;;  %2874 = vmatmul.mubr.msk.bf16.vlgmr.msra.gmra.mxu0 %vm155_vm11, %v3486_v11  ;;  %v1735_v18 = vld [vmem:[#allocation2] sm:$0xe] }
 0x8e3   :  { %2889 = vmatprep.mubr.msk.bf16.mxu0 %vm3200_vm8, %v3199_v12  ;;  %v2593_v22 = vcombine.low %v1735_v18, %v1608_v19  ;;  %2886 = vmatpush3.bf16.msra.mxu0 %v3051_v9 }
 0x8e4   :  { %v1621_v14 = vshll.u32 %v2586_v13, 16  ;;  %v1619_v15 = vshrl.u32 %v2586_v13, 16  ;;  %2887 = vmatprep.subr.bf16.mxu0 %v3199_v12 }
 0x8e5   :  { %v1743_v24 = vrot.slane %v2593_v22, 1 }
 0x8e6   :  { %v1623_v16 = vrot.slane %v1621_v14, 1 }
 0x8e7   :  { %2888 = vmatpush3.bf16.msra.mxu0 %v3052_v28 }
 0x8e8   :  { %v1624_v17 = vor.u32 %v1623_v16, %v1619_v15  ;;  %2901 = vmatprep.subr.bf16.mxu0 %v3199_v12 }
 0x8ea   :  { %2866 = vmatmul.mubr.msk.bf16.vlgmr.msra.gmra.mxu1 %vm155_vm11, %v1624_v17 }
 0x8eb   :  { %2878 = vmatpush3.bf16.msra.mxu1 %v3044_v10  ;;  %2881 = vmatprep.mubr.msk.bf16.mxu1 %vm3200_vm8, %v3199_v12 }
 0x8ec   :  { %2879 = vmatprep.subr.bf16.mxu1 %v3199_v12 }
 0x8ef   :  { %2880 = vmatpush3.bf16.msra.mxu1 %v3045_v20 }
 0x8f0   :  { %2893 = vmatprep.subr.bf16.mxu1 %v3199_v12 }
 0x8f2   :  { %2882 = vmatmul.mubr.msk.bf16.vlgmr.msra.gmra.mxu1 %vm155_vm11, %v1743_v24 }
 0x8f3   :  { %2897 = vmatprep.mubr.msk.bf16.mxu1 %vm3200_vm8, %v3199_v12  ;;  %2894 = vmatpush3.bf16.msra.mxu1 %v3047_v0 }
 0x8f4   :  { %2895 = vmatprep.subr.bf16.mxu1 %v3199_v12 }
 0x8f7   :  { %2896 = vmatpush3.bf16.msra.mxu1 %v3048_v21 }
 0x8f8   :  { %2909 = vmatprep.subr.bf16.mxu1 %v3199_v12 }
 0x9a2   :  { %v1729_v52 = vpop.f32.mrf.mxu0 }
 0x9a4   :  { %v2875_v27 = vpop.f32.mrf.mxu0 }
 0x9a6   :  { %v1732_v29 = vpop.f32.mrf.mxu0 }
 0x9a8   :  { %v2876_v32 = vpop.f32.mrf.mxu0 }
 0x9aa   :  { %v1674_v34 = vpop.f32.mrf.mxu1 }
 0x9ab   :  { %v1730_v41 = vadd.f32 %v1729_v52, %v1674_v34  ;;  %v1327_v52 = vunpack.c.l.bf16 %v3385_v46  ;;  %v1860_v46 = vld [vmem:[#allocation2 + $0x4] sm:$0x1] }
 0x9ac   :  { %v2867_v36 = vpop.f32.mrf.mxu1 }
 0x9ae   :  { %v1677_v37 = vpop.f32.mrf.mxu1 }
 0x9b0   :  { %v2868_v39 = vpop.f32.mrf.mxu1 }
 0x9b2   :  { %v1793_v43 = vpop.f32.mrf.mxu1 }
 0x9b3   :  { %v1799_v44 = vadd.f32 %v1793_v43, %v1730_v41 }
 0x9b4   :  { %v2883_v45 = vpop.f32.mrf.mxu1 }
 0x9b5   :  { %v1800_v5 = vsel %vm155_vm11, %v1799_v44, 0.0  ;;  %v1811_v47 = vmul.f32 %v1799_v44, %v1799_v44 }
 0x9b6   :  { %v1796_v48 = vpop.f32.mrf.mxu1  ;;  %1801 = vadd.xlane.f32.xlu0 %v1800_v5 }
 0x9b7   :  { %v1812_v54 = vsel %vm155_vm11, %v1811_v47, 0.0 }
 0x9b8   :  { %v2884_v49 = vpop.f32.mrf.mxu1 }
 0x9ba   :  { %1813 = vadd.xlane.f32.xlu0 %v1812_v54 }
 0xa3f   :  { %v1802_v50 = vpop.xlane.xlu0 %1801 }
 0xa40   :  { %v1803_v51 = vrot.slane %v1802_v50, 4 }
 0xa42   :  { %v1804_v56 = vadd.f32 %v1803_v51, %v1802_v50 }
 0xa43   :  { %v1814_v30 = vpop.xlane.xlu0 %1813 }
 0xa44   :  { %v1805_v58 = vrot.slane %v1804_v56, 2  ;;  %v1815_v59 = vrot.slane %v1814_v30, 4 }
 0xa46   :  { %v1816_v60 = vadd.f32 %v1815_v59, %v1814_v30  ;;  %v1806_v61 = vadd.f32 %v1805_v58, %v1804_v56 }
 0xa48   :  { %v1817_v62 = vrot.slane %v1816_v60, 2  ;;  %v1807_v63 = vrot.slane %v1806_v61, 1 }
 0xa4a   :  { %v1808_v3 = vadd.f32 %v1807_v63, %v1806_v61  ;;  %v1818_v4 = vadd.f32 %v1817_v62, %v1816_v60  ;;  %v3053_v61 = vld [vmem:[#allocation7 + $0x108] sm:$0xff]  }
 0xa4c   :  { %2970 = vpush %v1808_v3  ;;  %v1819_v6 = vrot.slane %v1818_v4, 1 }
 0xa4e   :  { %v1820_v8 = vadd.f32 %v1819_v6, %v1818_v4 }
 0xa50   :  { %2972 = vpush %v1820_v8 }
 0xa7d   :  { %s2971_s18 = spop %2970 }
 0xa7e   :  { %v1810_v31 = vstv %s2971_s18 }
 0xa7f   :  { %v1823_v19 = vmul.f32 0.00390625, %v1810_v31 }
 0xa81   :  { %s2973_s19 = spop %2972  ;;  %v1825_v14 = vmul.f32 %v1823_v19, %v1823_v19  ;;  %v1828_v18 = vsub.f32 %v1799_v44, %v1823_v19 }
 0xa82   :  { %v1822_v13 = vstv %s2973_s19 }
 0xa83   :  { %v1824_v15 = vmul.f32 0.00390625, %v1822_v13 }
 0xa85   :  { %v1826_v16 = vsub.f32 %v1824_v15, %v1825_v14 }
 0xa87   :  { %v1827_v10 = vmax.f32 %v1826_v16, 0.0 }
 0xa89   :  { %v1829_v17 = vadd.f32 1e-05, %v1827_v10 }
 0xa8b   :  { %3091 = vrsqrt.f32 %v1829_v17 }
 0xa98   :  { %v3092_v20 = vpop.eup %3091 }
 0xa99   :  { %v1831_v22 = vmul.f32 %v3092_v20, %v1828_v18  ;;  %v3055_v20 = vld [vmem:[#allocation7 + $0x138] sm:$0xff]  }
 0xa9b   :  { %v1832_v24 = vmul.f32 %v3335_v53, %v1831_v22 }
 0xa9d   :  { %v1833_v27 = vadd.f32 %v3337_v55, %v1832_v24 }
 0xa9f   :  { %v1834_v29 = vadd.f32 %v1833_v27, %v1327_v52  ;;  %v3056_v27 = vld [vmem:[#allocation7 + $0x130] sm:$0xff]  }
 0xaa1   :  { %v1835_v32 = vmul.f32 %v1834_v29, %v1834_v29 }
 0xaa3   :  { %v1836_v34 = vmul.f32 %v1835_v32, %v1834_v29 }
 0xaa5   :  { %v1837_v36 = vmul.f32 0.044715, %v1836_v34 }
 0xaa7   :  { %v1838_v37 = vadd.f32 %v1837_v36, %v1834_v29  ;;  %v3057_v36 = vld [vmem:[#allocation7 + $0x158] sm:$0xff]  }
 0xaa9   :  { %v1839_v39 = vmul.f32 0.7978846, %v1838_v37 }
 0xaab   :  { %3093 = vtanh.f32 %v1839_v39 }
 0xab8   :  { %v3094_v41 = vpop.eup %3093 }
 0xab9   :  { %v1841_v43 = vadd.f32 1.0, %v3094_v41  ;;  %v3058_v41 = vld [vmem:[#allocation7 + $0x128] sm:$0xff]  }
 0xabb   :  { %v1842_v45 = vmul.f32 0.5, %v1841_v43  ;;  %v3059_v43 = vld [vmem:[#allocation7 + $0x150] sm:$0xff]  }
 0xabd   :  { %v1843_v5 = vmul.f32 %v1842_v45, %v1834_v29 }
 0xabf   :  { %v2634_v44 = vpack.c.bf16 %v1843_v5, %v1843_v5 }
 0xac1   :  { %v1849_v47 = vshrl.u32 %v2634_v44, 16  ;;  %v1852_v49 = vshll.u32 %v2634_v44, 16  ;;  %v3060_v44 = vld [vmem:[#allocation7 + $0x120] sm:$0xff]  }
 0xac3   :  { %v1851_v48 = vrot.slane %v1849_v47, 7 }
 0xac5   :  { %v1854_v53 = vor.u32 %v1852_v49, %v1851_v48  ;;  %v1855_v54 = vrot.slane %v1851_v48, 4  ;;  %v3061_v49 = vld [vmem:[#allocation7 + $0x148] sm:$0xff]  }
 0xac7   :  { %v1858_v55 = vsel %vm3274_vm10, %v1854_v53, %v3486_v11  ;;  %v1861_v50 = vsel %vm3244_vm4, %v1855_v54, %v1860_v46  ;;  %v3064_v46 = vld [vmem:[#allocation7 + $0x140] sm:$0xff]  }
 0xac8   :  { %1859 = vst [vmem:[#allocation2] sm:$0xf] %v1858_v55  ;;  %1862 = vst [vmem:[#allocation2 + $0x4] sm:$0x1] %v1861_v50 }
 0xacf   :  { %v1863_v51 = vld [vmem:[#allocation2] sm:$0xf]  ;;  %v1868_v56 = vld [vmem:[#allocation2 + $0x4] sm:$0x1] }
 0xad0   :  { %v2598_v30 = vcombine.low %v1863_v51, %v1868_v56  ;;  %2898 = vmatmul.mubr.msk.bf16.vlgmr.msra.gmra.mxu1 %vm155_vm11, %v1863_v51  ;;  %v1995_v23 = vld [vmem:[#allocation2] sm:$0xe] }
 0xad1   :  { %2917 = vmatprep.mubr.msk.bf16.mxu1 %vm3200_vm8, %v3199_v12  ;;  %v2605_v11 = vcombine.low %v1995_v23, %v1868_v56  ;;  %2910 = vmatpush3.bf16.msra.mxu1 %v3057_v36 }
 0xad2   :  { %v1881_v58 = vshll.u32 %v2598_v30, 16  ;;  %v1879_v59 = vshrl.u32 %v2598_v30, 16  ;;  %2911 = vmatprep.subr.bf16.mxu1 %v3199_v12 }
 0xad3   :  { %v2003_v63 = vrot.slane %v2605_v11, 1 }
 0xad4   :  { %v1883_v60 = vrot.slane %v1881_v58, 1 }
 0xad5   :  { %2912 = vmatpush3.bf16.msra.mxu1 %v3059_v43 }
 0xad6   :  { %v1884_v62 = vor.u32 %v1883_v60, %v1879_v59  ;;  %2913 = vmatprep.subr.bf16.mxu1 %v3199_v12 }
 0xad8   :  { %2890 = vmatmul.mubr.msk.bf16.vlgmr.msra.gmra.mxu0 %vm155_vm11, %v1884_v62 }
 0xad9   :  { %2902 = vmatpush3.bf16.msra.mxu0 %v3053_v61  ;;  %2905 = vmatprep.mubr.msk.bf16.mxu0 %vm3200_vm8, %v3199_v12 }
 0xada   :  { %2903 = vmatprep.subr.bf16.mxu0 %v3199_v12  ;;  %2914 = vmatpush3.bf16.msra.mxu1 %v3061_v49 }
 0xadb   :  { %2915 = vmatprep.subr.bf16.mxu1 %v3199_v12 }
 0xadd   :  { %2904 = vmatpush3.bf16.msra.mxu0 %v3054_v1 }
 0xade   :  { %2921 = vmatprep.subr.bf16.mxu0 %v3199_v12  ;;  %2916 = vmatpush3.bf16.msra.mxu1 %v3064_v46 }
 0xadf   :  { %2933 = vmatprep.subr.bf16.mxu1 %v3199_v12 }
 0xae0   :  { %2906 = vmatmul.mubr.msk.bf16.vlgmr.msra.gmra.mxu0 %vm155_vm11, %v2003_v63 }
 0xae1   :  { %2929 = vmatprep.mubr.msk.bf16.mxu0 %vm3200_vm8, %v3199_v12  ;;  %2922 = vmatpush3.bf16.msra.mxu0 %v3055_v20 }
 0xae2   :  { %2923 = vmatprep.subr.bf16.mxu0 %v3199_v12 }
 0xae5   :  { %2924 = vmatpush3.bf16.msra.mxu0 %v3056_v27 }
 0xae6   :  { %2925 = vmatprep.subr.bf16.mxu0 %v3199_v12 }
 0xae9   :  { %2926 = vmatpush3.bf16.msra.mxu0 %v3058_v41 }
 0xaea   :  { %2927 = vmatprep.subr.bf16.mxu0 %v3199_v12 }
 0xaed   :  { %2928 = vmatpush3.bf16.msra.mxu0 %v3060_v44 }
 0xaee   :  { %2945 = vmatprep.subr.mxu0 %v3199_v12 }
 0xb90   :  { %v1989_v0 = vpop.f32.mrf.mxu1 }
 0xb92   :  { %v2899_v3 = vpop.f32.mrf.mxu1 }
 0xb94   :  { %v1992_v4 = vpop.f32.mrf.mxu1 }
 0xb96   :  { %v2900_v21 = vpop.f32.mrf.mxu1 }
 0xb98   :  { %v1934_v6 = vpop.f32.mrf.mxu0 }
 0xb99   :  { %v1990_v31 = vadd.f32 %v1989_v0, %v1934_v6 }
 0xb9a   :  { %v2891_v8 = vpop.f32.mrf.mxu0 }
 0xb9c   :  { %v1937_v9 = vpop.f32.mrf.mxu0 }
 0xb9e   :  { %v2892_v28 = vpop.f32.mrf.mxu0 }
 0xba0   :  { %v2053_v19 = vpop.f32.mrf.mxu0 }
 0xba1   :  { %v3526_v13 = vadd.f32 %v2053_v19, %v1990_v31 }
 0xba2   :  { %v2907_v14 = vpop.f32.mrf.mxu0 }
 0xba3   :  { %v2060_v15 = vsel %vm861_vm12, %v3526_v13, 0.0  ;;  %v2071_v16 = vmul.f32 %v3526_v13, %v3526_v13 }
 0xba4   :  { %2061 = vadd.xlane.f32.xlu0 %v2060_v15  ;;  %v2056_v10 = vpop.f32.mrf.mxu0 }
 0xba5   :  { %v2072_v18 = vsel %vm861_vm12, %v2071_v16, 0.0  ;;  %v2117_v10 = vld [vmem:[#allocation3] sm:$0xf] }
 0xba6   :  { %v2908_v17 = vpop.f32.mrf.mxu0 }
 0xba8   :  { %2073 = vadd.xlane.f32.xlu0 %v2072_v18 }
 0xc2d   :  { %v2062_v22 = vpop.xlane.xlu0 %2061 }
 0xc2e   :  { %v2063_v24 = vrot.slane %v2062_v22, 4 }
 0xc30   :  { %v2064_v52 = vadd.f32 %v2063_v24, %v2062_v22 }
 0xc31   :  { %v2074_v29 = vpop.xlane.xlu0 %2073 }
 0xc32   :  { %v2065_v32 = vrot.slane %v2064_v52, 2  ;;  %v2075_v34 = vrot.slane %v2074_v29, 4 }
 0xc34   :  { %v2076_v37 = vadd.f32 %v2075_v34, %v2074_v29  ;;  %v2066_v39 = vadd.f32 %v2065_v32, %v2064_v52  ;;  %v3067_v32 = vld [vmem:[#allocation7 + $0x168] sm:$0xff]   ;;  %v3068_v34 = vld [vmem:[#allocation7 + $0x160] sm:$0xff]  }
 0xc36   :  { %v2077_v45 = vrot.slane %v2076_v37, 2  ;;  %v2067_v5 = vrot.slane %v2066_v39, 1 }
 0xc38   :  { %v2068_v47 = vadd.f32 %v2067_v5, %v2066_v39  ;;  %v2078_v48 = vadd.f32 %v2077_v45, %v2076_v37  ;;  %v2627_v39 = vld [vmem:[%s3580_s3 + $0x1] sm:$0x1] }
 0xc39   :  { %v2628_v41 = vmul.f32 -1.442695, %v2627_v39 }
 0xc3a   :  { %2974 = vpush %v2068_v47  ;;  %v2079_v53 = vrot.slane %v2078_v48, 1 }
 0xc3c   :  { %v2080_v54 = vadd.f32 %v2079_v53, %v2078_v48 }
 0xc3e   :  { %2976 = vpush %v2080_v54 }
 0xc6b   :  { %s2975_s20 = spop %2974 }
 0xc6c   :  { %v2070_v55 = vstv %s2975_s20 }
 0xc6d   :  { %v2083_v50 = vmul.f32 0.001953125, %v2070_v55 }
 0xc6f   :  { %s2977_s21 = spop %2976  ;;  %v2085_v56 = vmul.f32 %v2083_v50, %v2083_v50  ;;  %v2088_v61 = vsub.f32 %v3526_v13, %v2083_v50 }
 0xc70   :  { %v2082_v51 = vstv %s2977_s21 }
 0xc71   :  { %v2084_v30 = vmul.f32 0.001953125, %v2082_v51 }
 0xc73   :  { %v2086_v58 = vsub.f32 %v2084_v30, %v2085_v56 }
 0xc75   :  { %v2087_v59 = vmax.f32 %v2086_v58, 0.0 }
 0xc77   :  { %v2089_v60 = vadd.f32 1e-05, %v2087_v59 }
 0xc79   :  { %3095 = vrsqrt.f32 %v2089_v60 }
 0xc86   :  { %v3096_v62 = vpop.eup %3095 }
 0xc87   :  { %v2091_v23 = vmul.f32 %v3096_v62, %v2088_v61 }
 0xc89   :  { %v2092_v1 = vmul.f32 %v3376_v25, %v2091_v23  ;;  %v2120_v25 = vld [vmem:[#allocation3 + $0x4] sm:$0x1] }
 0xc8b   :  { %v2093_v11 = vadd.f32 %v3378_v26, %v2092_v1 }
 0xc8d   :  { %v2094_v63 = vmul.f32 %v2093_v11, %v2093_v11 }
 0xc8f   :  { %v2095_v0 = vmul.f32 %v2094_v63, %v2093_v11 }
 0xc91   :  { %v2096_v3 = vmul.f32 0.044715, %v2095_v0 }
 0xc93   :  { %v2097_v4 = vadd.f32 %v2096_v3, %v2093_v11 }
 0xc95   :  { %v2098_v21 = vmul.f32 0.7978846, %v2097_v4 }
 0xc97   :  { %3097 = vtanh.f32 %v2098_v21 }
 0xc98   :  { %3099 = vpow2.f32 %v2628_v41 }
 0xca4   :  { %v3098_v6 = vpop.eup %3097 }
 0xca5   :  { %v2100_v8 = vadd.f32 1.0, %v3098_v6  ;;  %v3100_v43 = vpop.eup %3099 }
 0xca6   :  { %v2408_v45 = vadd.f32 1.0, %v3100_v43 }
 0xca7   :  { %v2101_v9 = vmul.f32 0.5, %v2100_v8 }
 0xca8   :  { %3101 = vrcp.f32 %v2408_v45 }
 0xca9   :  { %v2102_v28 = vmul.f32 %v2101_v9, %v2093_v11 }
 0xcab   :  { %v2635_v31 = vpack.c.bf16 %v2102_v28, %v2102_v28 }
 0xcad   :  { %v2108_v19 = vshrl.u32 %v2635_v31, 16  ;;  %v2111_v13 = vshll.u32 %v2635_v31, 16 }
 0xcaf   :  { %v2110_v14 = vrot.slane %v2108_v19, 7 }
 0xcb1   :  { %v2113_v15 = vor.u32 %v2111_v13, %v2110_v14  ;;  %v2114_v16 = vrot.slane %v2110_v14, 4 }
 0xcb3   :  { %v2118_v26 = vsel %vm3390_vm14, %v2113_v15, %v2117_v10  ;;  %v2121_v17 = vsel %vm3249_vm6, %v2114_v16, %v2120_v25 }
 0xcb4   :  { %2119 = vst [vmem:[#allocation3] sm:$0xf] %v2118_v26  ;;  %2122 = vst [vmem:[#allocation3 + $0x4] sm:$0x1] %v2121_v17 }
 0xcb5   :  { %v3102_v5 = vpop.eup %3101 }
 0xcb6   :  { %v2411_v44 = vmul.f32 %v3102_v5, %v2627_v39 }
 0xcbb   :  { %v2123_v18 = vld [vmem:[#allocation3] sm:$0xf]  ;;  %v2132_v20 = vld [vmem:[#allocation3 + $0x4] sm:$0x1] }
 0xcbc   :  { %v2610_v22 = vcombine.low %v2123_v18, %v2132_v20  ;;  %2930 = vmatmul.mubr.msk.bf16.vlgmr.msra.gmra.mxu0 %vm861_vm12, %v2123_v18 }
 0xcbd   :  { %2946 = vmatpush3.msra.mxu0 %v3402_v7  ;;  %2947 = vmatprep.mubr.msk.f32.mxu0 %vm3200_vm8, %v3199_v12  ;;  %v2287_v7 = vld [vmem:[#allocation3] sm:$0xe] }
 0xcbe   :  { %v2149_v24 = vshll.u32 %v2610_v22, 16  ;;  %v2147_v52 = vshrl.u32 %v2610_v22, 16  ;;  %v2621_v36 = vcombine.low %v2287_v7, %v2132_v20 }
 0xcc0   :  { %v2151_v27 = vrot.slane %v2149_v24, 1  ;;  %v2299_v37 = vrot.slane %v2621_v36, 1 }
 0xcc2   :  { %v2152_v29 = vor.u32 %v2151_v27, %v2147_v52 }
 0xcc4   :  { %2918 = vmatmul.mubr.msk.bf16.vlgmr.msra.gmra.mxu1 %vm861_vm12, %v2152_v29  ;;  %2948 = vmatmul.mubr.msk.f32.vlgmr.msra.gmra.mxu0 %vm1235_vm15, %v2411_v44 }
 0xcc5   :  { %2934 = vmatpush3.bf16.msra.mxu1 %v3065_v57  ;;  %2941 = vmatprep.mubr.msk.bf16.mxu1 %vm3200_vm8, %v3199_v12 }
 0xcc6   :  { %2935 = vmatprep.subr.bf16.mxu1 %v3199_v12 }
 0xcc9   :  { %2936 = vmatpush3.bf16.msra.mxu1 %v3066_v2 }
 0xcca   :  { %2937 = vmatprep.subr.bf16.mxu1 %v3199_v12 }
 0xccd   :  { %2938 = vmatpush3.bf16.msra.mxu1 %v3067_v32 }
 0xcce   :  { %2939 = vmatprep.subr.bf16.mxu1 %v3199_v12 }
 0xcd1   :  { %2940 = vmatpush3.bf16.msra.mxu1 %v3068_v34 }
 0xcd4   :  { %2942 = vmatmul.mubr.msk.bf16.vlgmr.msra.gmra.mxu1 %vm861_vm12, %v2299_v37 }
 0xd7c   :  { %v2281_v47 = vpop.f32.mrf.mxu0 }
 0xd7e   :  { %v2931_v48 = vpop.f32.mrf.mxu0 }
 0xd80   :  { %v2284_v12 = vpop.f32.mrf.mxu0 }
 0xd82   :  { %v2932_v49 = vpop.f32.mrf.mxu0 }
 0xd84   :  { %v2214_v53 = vpop.f32.mrf.mxu1  ;;  %v2481_v23 = vpop.f32.mrf.mxu0 }
 0xd85   :  { %v2282_v50 = vadd.f32 %v2281_v47, %v2214_v53  ;;  %v2482_v24 = vadd.f32 %v2481_v23, %v3463_v35 }
 0xd86   :  { %v2919_v54 = vpop.f32.mrf.mxu1  ;;  %v2949_v1 = vpop.f32.mrf.mxu0 }
 0xd87   :  { %v2488_v29 = vrot.slane %v2482_v24, %v1311_v40 }
 0xd88   :  { %v2217_v46 = vpop.f32.mrf.mxu1 }
 0xd8a   :  { %v2920_v55 = vpop.f32.mrf.mxu1 }
 0xd94   :  { %v2361_v51 = vpop.f32.mrf.mxu1 }
 0xd95   :  { %v2367_v56 = vadd.f32 %v2361_v51, %v2282_v50 }
 0xd96   :  { %v2943_v30 = vpop.f32.mrf.mxu1 }
 0xd97   :  { %v2368_v58 = vsel %vm861_vm12, %v2367_v56, 0.0  ;;  %v2379_v59 = vmul.f32 %v2367_v56, %v2367_v56 }
 0xd98   :  { %v2364_v60 = vpop.f32.mrf.mxu1  ;;  %2369 = vadd.xlane.f32.xlu0 %v2368_v58 }
 0xd99   :  { %v2380_v62 = vsel %vm861_vm12, %v2379_v59, 0.0 }
 0xd9a   :  { %v2944_v61 = vpop.f32.mrf.mxu1 }
 0xd9c   :  { %2381 = vadd.xlane.f32.xlu0 %v2380_v62 }
 0xe21   :  { %v2370_v11 = vpop.xlane.xlu0 %2369 }
 0xe22   :  { %v2371_v63 = vrot.slane %v2370_v11, 4 }
 0xe24   :  { %v2372_v0 = vadd.f32 %v2371_v63, %v2370_v11 }
 0xe25   :  { %v2382_v3 = vpop.xlane.xlu0 %2381 }
 0xe26   :  { %v2373_v4 = vrot.slane %v2372_v0, 2  ;;  %v2383_v21 = vrot.slane %v2382_v3, 4 }
 0xe28   :  { %v2384_v6 = vadd.f32 %v2383_v21, %v2382_v3  ;;  %v2374_v8 = vadd.f32 %v2373_v4, %v2372_v0 }
 0xe2a   :  { %v2385_v9 = vrot.slane %v2384_v6, 2  ;;  %v2375_v28 = vrot.slane %v2374_v8, 1 }
 0xe2c   :  { %v2386_v31 = vadd.f32 %v2385_v9, %v2384_v6  ;;  %v2376_v19 = vadd.f32 %v2375_v28, %v2374_v8 }
 0xe2e   :  { %2978 = vpush %v2376_v19  ;;  %v2387_v14 = vrot.slane %v2386_v31, 1 }
 0xe30   :  { %v2388_v13 = vadd.f32 %v2387_v14, %v2386_v31 }
 0xe32   :  { %2980 = vpush %v2388_v13 }
 0xe5f   :  { %s2979_s3 = spop %2978 }
 0xe60   :  { %v2378_v15 = vstv %s2979_s3 }
 0xe61   :  { %v2391_v16 = vmul.f32 0.001953125, %v2378_v15 }
 0xe63   :  { %s2981_s24 = spop %2980  ;;  %v2393_v25 = vmul.f32 %v2391_v16, %v2391_v16  ;;  %v2396_v22 = vsub.f32 %v2367_v56, %v2391_v16 }
 0xe64   :  { %v2390_v10 = vstv %s2981_s24 }
 0xe65   :  { %v2392_v26 = vmul.f32 0.001953125, %v2390_v10 }
 0xe67   :  { %v2394_v17 = vsub.f32 %v2392_v26, %v2393_v25 }
 0xe69   :  { %v2395_v18 = vmax.f32 %v2394_v17, 0.0 }
 0xe6b   :  { %v2397_v20 = vadd.f32 1e-05, %v2395_v18 }
 0xe6d   :  { %3103 = vrsqrt.f32 %v2397_v20 }
 0xe7a   :  { %v3104_v52 = vpop.eup %3103 }
 0xe7b   :  { %v2399_v27 = vmul.f32 %v3104_v52, %v2396_v22 }
 0xe7d   :  { %v2400_v57 = vmul.f32 %v3466_v38, %v2399_v27 }
 0xe7f   :  { %v2401_v2 = vadd.f32 %v3471_v42, %v2400_v57 }
 0xe81   :  { %v2489_v32 = vadd.f32 %v2488_v29, %v2401_v2 }
 0xe83   :  { %2491 = vst.msk [vmem:[#allocation10 + $0x8] sm:$0xff] %vm861_vm12, %v2489_v32 }
 0xe84   :  { %3176 = shalt.err (!%p3173_p5)
}
 0xe85   :  { %2503 = dma.vmem_to_hbm [thread:$0]  %s2498_s26, 256, %s3581_s4, [#allocation6], %s3196_s1, %s3196_s1, %s3197_s30  }
 0xe86   :  { %3189 = dma.done.wait [#allocation6], 256  }
 0xe87   :  { %3190 = vsyncadd [#allocation6], 4294967040 }
 0xe88   :  { %2507 = vsyncpa [#allocation5], 1 }
 0xe89   :  { %2508 = vsyncpa [#allocation8], 1 }
 0xe8a   :  { %2509 = vsyncpa [#allocation6], 1 }

</bundles_post_ra>
